<compile_context>
chip_gen: v7x
topology: tpu7x:2x2x1
jax: 0.10.0
libtpu: 0.0.40
codegen_flags: <defaults>
</compile_context>

<pallas_src>
import functools

import jax
import jax.numpy as jnp
from jax.experimental import pallas as pl
from jax.experimental.pallas import tpu as pltpu

_LANE = 128


def _detect_vmem_limit():
    """~75% of physical VMEM: ≈48 MiB on v7x (64 MiB), ≈96 MiB on v5e/v6e."""
    cap = 64 * 1024 * 1024
    try:
        get_info = getattr(pltpu, "get_tpu_info", None)
        if get_info is not None:
            info = get_info()
            cap = int(getattr(info, "vmem_capacity_bytes", cap) or cap)
    except Exception:
        pass
    return (cap * 3) // 4


_VMEM_LIMIT = _detect_vmem_limit()


# ----------------------------------------------------------------------------
# small helpers
# ----------------------------------------------------------------------------
def _round_up(x, m):
    return (x + m - 1) // m * m


def _pick_tile(total, pref):
    """Largest multiple-of-128 divisor of `total` (a 128-multiple) <= pref."""
    assert total % _LANE == 0
    pref = max(_LANE, (pref // _LANE) * _LANE)
    t = min(pref, total)
    while total % t:
        t -= _LANE
    return max(t, _LANE)


def _pick_row_tile(total, pref):
    """Row (parallel-axis) tile; keeps >=2 row blocks when possible so both
    v7x TensorCores get work on the megacore-sharded axis."""
    t = _pick_tile(total, pref)
    if total // t < 2 and total >= 2 * _LANE:
        t = _pick_tile(total, total // 2)
    return t


def _pad2d(a, rows, cols=None):
    r = rows - a.shape[0]
    c = 0 if cols is None else cols - a.shape[1]
    if r == 0 and c == 0:
        return a
    return jnp.pad(a, ((0, r), (0, c)))


# ----------------------------------------------------------------------------
# Kernel 1: K-tiled linear  y = relu(x @ w + b),  f32 accumulator
# ----------------------------------------------------------------------------
def _linear_kernel(x_ref, w_ref, b_ref, o_ref, acc_ref, *, apply_relu):
    k = pl.program_id(1)

    @pl.when(k == 0)
    def _init():
        acc_ref[...] = jnp.zeros_like(acc_ref)

    acc_ref[...] += jnp.dot(x_ref[...], w_ref[...],
                            preferred_element_type=jnp.float32)

    @pl.when(k == pl.num_programs(1) - 1)
    def _fin():
        out = acc_ref[...] + b_ref[...]
        if apply_relu:
            out = jnp.maximum(out, 0.0)
        o_ref[...] = out.astype(o_ref.dtype)


def linear(x, w, b, *, relu=False, out_dtype=None, tm=512, tk=2048):
    M, K = x.shape
    K2, N = w.shape
    assert K == K2 and b.shape == (1, N)
    assert M % _LANE == 0 and K % _LANE == 0
    tm = _pick_row_tile(M, tm)
    tk = _pick_tile(K, tk)
    out_dtype = out_dtype or x.dtype
    return pl.pallas_call(
        functools.partial(_linear_kernel, apply_relu=relu),
        out_shape=jax.ShapeDtypeStruct((M, N), out_dtype),
        grid_spec=pltpu.PrefetchScalarGridSpec(
            num_scalar_prefetch=0,
            grid=(M // tm, K // tk),
            in_specs=[
                pl.BlockSpec((tm, tk), lambda i, k: (i, k)),
                pl.BlockSpec((tk, N), lambda i, k: (k, 0)),
                pl.BlockSpec((1, N), lambda i, k: (0, 0)),
            ],
            out_specs=pl.BlockSpec((tm, N), lambda i, k: (i, 0)),
            scratch_shapes=[pltpu.VMEM((tm, N), jnp.float32)],
        ),
        compiler_params=pltpu.CompilerParams(
            dimension_semantics=("parallel", "arbitrary"),
            vmem_limit_bytes=_VMEM_LIMIT),
    )(x, w, b)


# ----------------------------------------------------------------------------
# Kernel 2: fused H2GCN hop #1 + eval-mode BatchNorm:
#   out = [adj1 @ h | adj2 @ h] * scale + shift
# K-tiled over the node dim; two f32 accumulators; no concat (direct slice
# stores into the lane-dense (tm, 2F) output block).
# ----------------------------------------------------------------------------
def _hop_bn_kernel(a1_ref, a2_ref, h_ref, sc_ref, sh_ref, o_ref,
                   acc1_ref, acc2_ref, *, F):
    k = pl.program_id(1)

    @pl.when(k == 0)
    def _init():
        acc1_ref[...] = jnp.zeros_like(acc1_ref)
        acc2_ref[...] = jnp.zeros_like(acc2_ref)

    h = h_ref[...]
    acc1_ref[...] += jnp.dot(a1_ref[...], h, preferred_element_type=jnp.float32)
    acc2_ref[...] += jnp.dot(a2_ref[...], h, preferred_element_type=jnp.float32)

    @pl.when(k == pl.num_programs(1) - 1)
    def _fin():
        sc = sc_ref[...]
        sh = sh_ref[...]
        o_ref[:, :F] = (acc1_ref[...] * sc[:, :F] + sh[:, :F]).astype(o_ref.dtype)
        o_ref[:, F:] = (acc2_ref[...] * sc[:, F:] + sh[:, F:]).astype(o_ref.dtype)


def hop_bn(adj1, adj2, h, scale, shift, *, tm=512, tk=4096):
    Np = adj1.shape[0]
    F = h.shape[1]
    assert adj1.shape == adj2.shape == (Np, Np) and h.shape[0] == Np
    assert Np % _LANE == 0 and (2 * F) % _LANE == 0
    assert scale.shape == shift.shape == (1, 2 * F)
    tm = _pick_row_tile(Np, tm)
    tk = _pick_tile(Np, tk)

    return pl.pallas_call(
        functools.partial(_hop_bn_kernel, F=F),
        out_shape=jax.ShapeDtypeStruct((Np, 2 * F), h.dtype),
        grid_spec=pltpu.PrefetchScalarGridSpec(
            num_scalar_prefetch=0,
            grid=(Np // tm, Np // tk),
            in_specs=[
                pl.BlockSpec((tm, tk), lambda i, k: (i, k)),
                pl.BlockSpec((tm, tk), lambda i, k: (i, k)),
                pl.BlockSpec((tk, F), lambda i, k: (k, 0)),
                pl.BlockSpec((1, 2 * F), lambda i, k: (0, 0)),
                pl.BlockSpec((1, 2 * F), lambda i, k: (0, 0)),
            ],
            out_specs=pl.BlockSpec((tm, 2 * F), lambda i, k: (i, 0)),
            scratch_shapes=[pltpu.VMEM((tm, F), jnp.float32),
                            pltpu.VMEM((tm, F), jnp.float32)],
        ),
        compiler_params=pltpu.CompilerParams(
            dimension_semantics=("parallel", "arbitrary"),
            vmem_limit_bytes=_VMEM_LIMIT),
    )(adj1, adj2, h, scale, shift)


# ----------------------------------------------------------------------------
# Kernel 3: fused hop #2 + JumpingKnowledge('cat') + final Linear.
#   d1 = adj1 @ c, d2 = adj2 @ c   (K-tiled f32 accumulators, d never in HBM)
#   out = h @ W0 + c @ W1 + d1 @ W2a + d2 @ W2b + b     (lane-dense Op output)
# ----------------------------------------------------------------------------
def _hop_final_kernel(a1_ref, a2_ref, ck_ref, h_ref, c_ref,
                      w0_ref, w1_ref, w2a_ref, w2b_ref, b_ref,
                      o_ref, acc1_ref, acc2_ref):
    k = pl.program_id(1)

    @pl.when(k == 0)
    def _init():
        acc1_ref[...] = jnp.zeros_like(acc1_ref)
        acc2_ref[...] = jnp.zeros_like(acc2_ref)

    ck = ck_ref[...]
    acc1_ref[...] += jnp.dot(a1_ref[...], ck, preferred_element_type=jnp.float32)
    acc2_ref[...] += jnp.dot(a2_ref[...], ck, preferred_element_type=jnp.float32)

    @pl.when(k == pl.num_programs(1) - 1)
    def _fin():
        d1 = acc1_ref[...].astype(jnp.bfloat16)
        d2 = acc2_ref[...].astype(jnp.bfloat16)
        acc = jnp.dot(h_ref[...], w0_ref[...], preferred_element_type=jnp.float32)
        acc += jnp.dot(c_ref[...], w1_ref[...], preferred_element_type=jnp.float32)
        acc += jnp.dot(d1, w2a_ref[...], preferred_element_type=jnp.float32)
        acc += jnp.dot(d2, w2b_ref[...], preferred_element_type=jnp.float32)
        o_ref[...] = (acc + b_ref[...]).astype(o_ref.dtype)


def hop_final(adj1, adj2, c, h, w0, w1, w2a, w2b, b, *, tm=512, tk=4096):
    Np = adj1.shape[0]
    F2 = c.shape[1]          # 2 * Fp
    Fp = h.shape[1]
    Op = w0.shape[1]
    assert adj1.shape == adj2.shape == (Np, Np)
    assert c.shape[0] == Np and h.shape[0] == Np
    assert Np % _LANE == 0 and F2 % _LANE == 0 and Op % _LANE == 0
    assert w0.shape == (Fp, Op) and w1.shape == (F2, Op)
    assert w2a.shape == (F2, Op) and w2b.shape == (F2, Op) and b.shape == (1, Op)
    tm = _pick_row_tile(Np, tm)
    tk = _pick_tile(Np, tk)

    return pl.pallas_call(
        _hop_final_kernel,
        out_shape=jax.ShapeDtypeStruct((Np, Op), jnp.float32),
        grid_spec=pltpu.PrefetchScalarGridSpec(
            num_scalar_prefetch=0,
            grid=(Np // tm, Np // tk),
            in_specs=[
                pl.BlockSpec((tm, tk), lambda i, k: (i, k)),   # adj1
                pl.BlockSpec((tm, tk), lambda i, k: (i, k)),   # adj2
                pl.BlockSpec((tk, F2), lambda i, k: (k, 0)),   # c (K operand)
                pl.BlockSpec((tm, Fp), lambda i, k: (i, 0)),   # h row tile
                pl.BlockSpec((tm, F2), lambda i, k: (i, 0)),   # c row tile
                pl.BlockSpec((Fp, Op), lambda i, k: (0, 0)),   # W0
                pl.BlockSpec((F2, Op), lambda i, k: (0, 0)),   # W1
                pl.BlockSpec((F2, Op), lambda i, k: (0, 0)),   # W2a
                pl.BlockSpec((F2, Op), lambda i, k: (0, 0)),   # W2b
                pl.BlockSpec((1, Op), lambda i, k: (0, 0)),    # bias
            ],
            out_specs=pl.BlockSpec((tm, Op), lambda i, k: (i, 0)),
            scratch_shapes=[pltpu.VMEM((tm, F2), jnp.float32),
                            pltpu.VMEM((tm, F2), jnp.float32)],
        ),
        compiler_params=pltpu.CompilerParams(
            dimension_semantics=("parallel", "arbitrary"),
            vmem_limit_bytes=_VMEM_LIMIT),
    )(adj1, adj2, c, h, c, w0, w1, w2a, w2b, b)


# ----------------------------------------------------------------------------
# Host-side glue: adjacency preprocessing (H2GCN.init_adj) and parameters
# ----------------------------------------------------------------------------
def build_normalized_adjs(key, n, p=0.06):
    """Dense equivalent of init_adj: 1-hop adj, strict 2-hop adj, gcn_norm."""
    m = jax.random.uniform(key, (n, n))
    a = (m < p).astype(jnp.float32)
    a = jnp.maximum(a, a.T)                       # undirected
    eye = jnp.eye(n, dtype=jnp.float32)
    a = a * (1.0 - eye)                           # remove_diag
    a2 = (a @ a > 0).astype(jnp.float32)
    a2 = a2 * (1.0 - eye)                         # remove_diag
    a2 = jnp.clip(a2 - a, 0.0, 1.0)               # strict two-hop, {0,1}

    def gcn_norm(adj):                            # D^{-1/2} A D^{-1/2}
        deg = adj.sum(axis=1)
        dinv = jnp.where(deg > 0, 1.0 / jnp.sqrt(deg), 0.0)
        return dinv[:, None] * adj * dinv[None, :]

    # Cached once (like PyTorch init_adj); bf16 halves HBM traffic on the
    # dominant dense [N, N] reads, f32 accumulation happens in the kernels.
    # TODO(synk): int8 (v5e/v6e) / fp8 (v7x) quantization would halve it again.
    return (gcn_norm(a).astype(jnp.bfloat16),
            gcn_norm(a2).astype(jnp.bfloat16))


def init_params(key, in_channels, hidden, out_channels, num_layers=2):
    last_dim = hidden * (2 ** (num_layers + 1) - 1)   # 7 * hidden for L=2
    k = jax.random.split(key, 6)

    def lin_init(kw, kb, fan_in, fan_out):
        bound = 1.0 / jnp.sqrt(fan_in)
        w = jax.random.uniform(kw, (fan_in, fan_out), jnp.float32, -bound, bound)
        b = jax.random.uniform(kb, (1, fan_out), jnp.float32, -bound, bound)
        return w, b

    embed_w, embed_b = lin_init(k[0], k[1], in_channels, hidden)
    final_w, final_b = lin_init(k[2], k[3], last_dim, out_channels)
    bn_dim = hidden * 2
    return {
        "embed_w": embed_w, "embed_b": embed_b,
        "final_w": final_w, "final_b": final_b,
        # BatchNorm1d(hidden*2) eval-mode stats/affine (deterministic)
        "bn0_gamma": 1.0 + 0.05 * jax.random.normal(k[4], (bn_dim,), jnp.float32),
        "bn0_beta": 0.05 * jax.random.normal(k[5], (bn_dim,), jnp.float32),
        "bn0_mean": jnp.zeros((bn_dim,), jnp.float32),
        "bn0_var": jnp.ones((bn_dim,), jnp.float32),
    }


def fold_params(p, in_channels, hidden, out_channels):
    """Kernel-ready params: bf16 MXU weights, folded BN affine, split final W,
    and lane-density zero-padding (in->128, hidden->mult of 64, out->128)."""
    bf16 = jnp.bfloat16
    F = hidden
    Fp = _round_up(max(hidden, 64), 64)          # 2*Fp is a 128-multiple
    Cp = _round_up(in_channels, _LANE)
    Op = _round_up(out_channels, _LANE)

    ew = jnp.zeros((Cp, Fp), jnp.float32).at[:in_channels, :F].set(p["embed_w"])
    eb = jnp.zeros((1, Fp), jnp.float32).at[:, :F].set(p["embed_b"])

    scale = p["bn0_gamma"] / jnp.sqrt(p["bn0_var"] + 1e-5)
    shift = p["bn0_beta"] - p["bn0_mean"] * scale
    sc = jnp.ones((2 * Fp,), jnp.float32)
    sc = sc.at[:F].set(scale[:F]).at[Fp:Fp + F].set(scale[F:])
    sh = jnp.zeros((2 * Fp,), jnp.float32)
    sh = sh.at[:F].set(shift[:F]).at[Fp:Fp + F].set(shift[F:])

    fw, fb = p["final_w"], p["final_b"]          # (7F, O), (1, O)

    def blk(i):                                  # i-th F-row slice of final_w
        return fw[i * F:(i + 1) * F]

    def two(i, j):                               # scatter into padded c/d layout
        w = jnp.zeros((2 * Fp, Op), jnp.float32)
        w = w.at[:F, :out_channels].set(blk(i))
        w = w.at[Fp:Fp + F, :out_channels].set(blk(j))
        return w

    w0 = jnp.zeros((Fp, Op), jnp.float32).at[:F, :out_channels].set(blk(0))
    w1, w2a, w2b = two(1, 2), two(3, 4), two(5, 6)
    bias = jnp.zeros((1, Op), jnp.float32).at[:, :out_channels].set(fb)

    return {
        "embed_w": ew.astype(bf16), "embed_b": eb,      # f32 (1, Fp)
        "bn0_scale": sc[None, :], "bn0_shift": sh[None, :],
        "final_w0": w0.astype(bf16), "final_w1": w1.astype(bf16),
        "final_w2a": w2a.astype(bf16), "final_w2b": w2b.astype(bf16),
        "final_b": bias,                                 # f32 (1, Op)
    }


# ----------------------------------------------------------------------------
# H2GCN forward (eval mode: dropout == identity)
# ----------------------------------------------------------------------------
def h2gcn_forward(x, adj_t, adj_t2, kp, *, out_channels):
    N = x.shape[0]
    Np = _round_up(N, _LANE)
    Cp = kp["embed_w"].shape[0]

    # Zero row/col padding is exact: padded adjacency columns are zero, padded
    # feature columns are zero (zero weights/bias/shift), out is sliced below.
    xb = _pad2d(x, Np, Cp).astype(jnp.bfloat16)
    a1 = _pad2d(adj_t, Np, Np)
    a2 = _pad2d(adj_t2, Np, Np)

    # feature_embed (single Linear) + ReLU, fused in one kernel.
    # TODO(synk): dropout skipped (eval mode); add PRNG-masked version for training.
    h = linear(xb, kp["embed_w"], kp["embed_b"], relu=True,
               out_dtype=jnp.bfloat16)

    # conv 0 + eval-mode BatchNorm1d fused: BN(cat[adj_t @ h, adj_t2 @ h])
    c = hop_bn(a1, a2, h, kp["bn0_scale"], kp["bn0_shift"])

    # conv 1 (last) + JumpingKnowledge('cat') + final_project, all fused:
    # d = cat[adj_t @ c, adj_t2 @ c] never hits HBM.
    out = hop_final(a1, a2, c, h, kp["final_w0"], kp["final_w1"],
                    kp["final_w2a"], kp["final_w2b"], kp["final_b"])
    return out[:N, :out_channels]


# ----------------------------------------------------------------------------
# Pure-JAX reference mirroring the kernel dtype pipeline (bf16 in / f32 acc)
# ----------------------------------------------------------------------------
def h2gcn_reference(x, adj_t, adj_t2, kp, out_channels):
    f32, bf16 = jnp.float32, jnp.bfloat16
    N = x.shape[0]
    Np = _round_up(N, _LANE)
    Cp = kp["embed_w"].shape[0]

    xb = _pad2d(x, Np, Cp).astype(bf16).astype(f32)
    a1 = _pad2d(adj_t, Np, Np).astype(f32)
    a2 = _pad2d(adj_t2, Np, Np).astype(f32)

    h = jnp.maximum(xb @ kp["embed_w"].astype(f32) + kp["embed_b"], 0.0)
    h = h.astype(bf16)
    hf = h.astype(f32)
    c = jnp.concatenate([a1 @ hf, a2 @ hf], axis=1)
    c = (c * kp["bn0_scale"] + kp["bn0_shift"]).astype(bf16)
    cf = c.astype(f32)
    d1 = (a1 @ cf).astype(bf16).astype(f32)
    d2 = (a2 @ cf).astype(bf16).astype(f32)
    out = (hf @ kp["final_w0"].astype(f32)
           + cf @ kp["final_w1"].astype(f32)
           + d1 @ kp["final_w2a"].astype(f32)
           + d2 @ kp["final_w2b"].astype(f32)
           + kp["final_b"])
    return out[:N, :out_channels]


# ----------------------------------------------------------------------------
if __name__ == "__main__":
    num_nodes = 128
    in_channels = 16
    hidden_channels = 32
    out_channels = 8

    root = jax.random.PRNGKey(0)
    k_feat, k_adj, k_par = jax.random.split(root, 3)

    x = jax.random.normal(k_feat, (num_nodes, in_channels), jnp.float32)
    adj_t, adj_t2 = build_normalized_adjs(k_adj, num_nodes)
    params = init_params(k_par, in_channels, hidden_channels, out_channels)
    kp = fold_params(params, in_channels, hidden_channels, out_channels)

    fwd = jax.jit(h2gcn_forward, static_argnames=("out_channels",))
    out = fwd(x, adj_t, adj_t2, kp, out_channels=out_channels)
    jax.block_until_ready(out)

    assert out.shape == (num_nodes, out_channels), out.shape
    assert bool(jnp.all(jnp.isfinite(out)))

    ref = h2gcn_reference(x, adj_t, adj_t2, kp, out_channels)
    max_err = float(jnp.max(jnp.abs(out - ref)))
    assert max_err < 5e-3, f"max abs err vs reference: {max_err}"

    print("KERNEL_OK")
</pallas_src>

<mosaic_0001>
module attributes {stable_mosaic.version = 11 : i64} {
  func.func @_hop_bn_kernel(%arg0: i32, %arg1: i32, %arg2: memref<128x128xbf16, #tpu.memory_space<vmem>>, %arg3: memref<128x128xbf16, #tpu.memory_space<vmem>>, %arg4: memref<128x64xbf16, #tpu.memory_space<vmem>>, %arg5: memref<1x128xf32, #tpu.memory_space<vmem>>, %arg6: memref<1x128xf32, #tpu.memory_space<vmem>>, %arg7: memref<128x128xbf16, #tpu.memory_space<vmem>>, %arg8: memref<128x64xf32, #tpu.memory_space<vmem>>, %arg9: memref<128x64xf32, #tpu.memory_space<vmem>>) attributes {dimension_semantics = [#tpu.dimension_semantics<parallel>, #tpu.dimension_semantics<arbitrary>], iteration_bounds = array<i64: 1, 1>, scalar_prefetch = 0 : i64, scratch_operands = 2 : i64, tpu.core_type = #tpu.core_type<tc>, window_params = [{transform_indices = @transform_0, window_bounds = array<i64: 128, 128>}, {transform_indices = @transform_1, window_bounds = array<i64: 128, 128>}, {transform_indices = @transform_2, window_bounds = array<i64: 128, 64>}, {pipeline_mode = #tpu.pipeline_mode<synchronous>, transform_indices = @transform_3, window_bounds = array<i64: 1, 128>}, {pipeline_mode = #tpu.pipeline_mode<synchronous>, transform_indices = @transform_4, window_bounds = array<i64: 1, 128>}, {transform_indices = @transform_5, window_bounds = array<i64: 128, 128>}]} {
    %c0_i32 = arith.constant 0 : i32
    %0 = arith.cmpi eq, %arg1, %c0_i32 : i32
    %1 = arith.extui %0 : i1 to i32
    %c0_i32_0 = arith.constant 0 : i32
    %2 = arith.cmpi ne, %1, %c0_i32_0 : i32
    scf.if %2 {
      %cst_17 = arith.constant 0.000000e+00 : f32
      %17 = vector.broadcast %cst_17 : f32 to vector<128x64xf32>
      %c0_18 = arith.constant 0 : index
      %c0_19 = arith.constant 0 : index
      %18 = vector.load %arg8[%c0_18, %c0_19] : memref<128x64xf32, #tpu.memory_space<vmem>>, vector<128x64xf32>
      tpu.vector_store %arg8[%c0_18, %c0_19], %17 {strides = array<i32>} : memref<128x64xf32, #tpu.memory_space<vmem>>, vector<128x64xf32>,
      %cst_20 = arith.constant 0.000000e+00 : f32
      %19 = vector.broadcast %cst_20 : f32 to vector<128x64xf32>
      %c0_21 = arith.constant 0 : index
      %c0_22 = arith.constant 0 : index
      %20 = vector.load %arg9[%c0_21, %c0_22] : memref<128x64xf32, #tpu.memory_space<vmem>>, vector<128x64xf32>
      tpu.vector_store %arg9[%c0_21, %c0_22], %19 {strides = array<i32>} : memref<128x64xf32, #tpu.memory_space<vmem>>, vector<128x64xf32>,
    } else {
    }
    %c0 = arith.constant 0 : index
    %c0_1 = arith.constant 0 : index
    %3 = vector.load %arg4[%c0, %c0_1] : memref<128x64xbf16, #tpu.memory_space<vmem>>, vector<128x64xbf16>
    %c0_2 = arith.constant 0 : index
    %c0_3 = arith.constant 0 : index
    %4 = vector.load %arg8[%c0_2, %c0_3] : memref<128x64xf32, #tpu.memory_space<vmem>>, vector<128x64xf32>
    %c0_4 = arith.constant 0 : index
    %c0_5 = arith.constant 0 : index
    %5 = vector.load %arg2[%c0_4, %c0_5] : memref<128x128xbf16, #tpu.memory_space<vmem>>, vector<128x128xbf16>
    %cst = arith.constant dense<0.000000e+00> : vector<128x64xf32>
    %6 = tpu.matmul %5, %3, %cst {dimension_numbers = #tpu.dot_dimension_numbers<[1], [0], [0], [1], [0, 0, 1, 1], [], []>} : vector<128x128xbf16>, vector<128x64xbf16>, vector<128x64xf32> -> vector<128x64xf32>
    %7 = arith.addf %4, %6 : vector<128x64xf32>
    %c0_6 = arith.constant 0 : index
    %c0_7 = arith.constant 0 : index
    %8 = vector.load %arg8[%c0_6, %c0_7] : memref<128x64xf32, #tpu.memory_space<vmem>>, vector<128x64xf32>
    tpu.vector_store %arg8[%c0_6, %c0_7], %7 {strides = array<i32>} : memref<128x64xf32, #tpu.memory_space<vmem>>, vector<128x64xf32>,
    %c0_8 = arith.constant 0 : index
    %c0_9 = arith.constant 0 : index
    %9 = vector.load %arg9[%c0_8, %c0_9] : memref<128x64xf32, #tpu.memory_space<vmem>>, vector<128x64xf32>
    %c0_10 = arith.constant 0 : index
    %c0_11 = arith.constant 0 : index
    %10 = vector.load %arg3[%c0_10, %c0_11] : memref<128x128xbf16, #tpu.memory_space<vmem>>, vector<128x128xbf16>
    %cst_12 = arith.constant dense<0.000000e+00> : vector<128x64xf32>
    %11 = tpu.matmul %10, %3, %cst_12 {dimension_numbers = #tpu.dot_dimension_numbers<[1], [0], [0], [1], [0, 0, 1, 1], [], []>} : vector<128x128xbf16>, vector<128x64xbf16>, vector<128x64xf32> -> vector<128x64xf32>
    %12 = arith.addf %9, %11 : vector<128x64xf32>
    %c0_13 = arith.constant 0 : index
    %c0_14 = arith.constant 0 : index
    %13 = vector.load %arg9[%c0_13, %c0_14] : memref<128x64xf32, #tpu.memory_space<vmem>>, vector<128x64xf32>
    tpu.vector_store %arg9[%c0_13, %c0_14], %12 {strides = array<i32>} : memref<128x64xf32, #tpu.memory_space<vmem>>, vector<128x64xf32>,
    %c0_i32_15 = arith.constant 0 : i32
    %14 = arith.cmpi eq, %arg1, %c0_i32_15 : i32
    %15 = arith.extui %14 : i1 to i32
    %c0_i32_16 = arith.constant 0 : i32
    %16 = arith.cmpi ne, %15, %c0_i32_16 : i32
    scf.if %16 {
      %c0_17 = arith.constant 0 : index
      %c0_18 = arith.constant 0 : index
      %17 = vector.load %arg5[%c0_17, %c0_18] : memref<1x128xf32, #tpu.memory_space<vmem>>, vector<1x128xf32>
      %c0_19 = arith.constant 0 : index
      %c0_20 = arith.constant 0 : index
      %18 = vector.load %arg6[%c0_19, %c0_20] : memref<1x128xf32, #tpu.memory_space<vmem>>, vector<1x128xf32>
      %c0_21 = arith.constant 0 : index
      %c0_22 = arith.constant 0 : index
      %19 = vector.load %arg8[%c0_21, %c0_22] : memref<128x64xf32, #tpu.memory_space<vmem>>, vector<128x64xf32>
      %20 = vector.extract_strided_slice %17 {offsets = [0, 0], sizes = [1, 64], strides = [1, 1]} : vector<1x128xf32> to vector<1x64xf32>
      %21 = vector.broadcast %20 : vector<1x64xf32> to vector<128x64xf32>
      %22 = arith.mulf %19, %21 : vector<128x64xf32>
      %23 = vector.extract_strided_slice %18 {offsets = [0, 0], sizes = [1, 64], strides = [1, 1]} : vector<1x128xf32> to vector<1x64xf32>
      %24 = vector.broadcast %23 : vector<1x64xf32> to vector<128x64xf32>
      %25 = arith.addf %22, %24 : vector<128x64xf32>
      %26 = arith.truncf %25 : vector<128x64xf32> to vector<128x64xbf16>
      %c0_23 = arith.constant 0 : index
      %c0_24 = arith.constant 0 : index
      %27 = vector.load %arg7[%c0_23, %c0_24] : memref<128x128xbf16, #tpu.memory_space<vmem>>, vector<128x64xbf16>
      tpu.vector_store %arg7[%c0_23, %c0_24], %26 {strides = array<i32>} : memref<128x128xbf16, #tpu.memory_space<vmem>>, vector<128x64xbf16>,
      %c0_25 = arith.constant 0 : index
      %c0_26 = arith.constant 0 : index
      %28 = vector.load %arg9[%c0_25, %c0_26] : memref<128x64xf32, #tpu.memory_space<vmem>>, vector<128x64xf32>
      %29 = vector.extract_strided_slice %17 {offsets = [0, 64], sizes = [1, 64], strides = [1, 1]} : vector<1x128xf32> to vector<1x64xf32>
      %30 = vector.broadcast %29 : vector<1x64xf32> to vector<128x64xf32>
      %31 = arith.mulf %28, %30 : vector<128x64xf32>
      %32 = vector.extract_strided_slice %18 {offsets = [0, 64], sizes = [1, 64], strides = [1, 1]} : vector<1x128xf32> to vector<1x64xf32>
      %33 = vector.broadcast %32 : vector<1x64xf32> to vector<128x64xf32>
      %34 = arith.addf %31, %33 : vector<128x64xf32>
      %35 = arith.truncf %34 : vector<128x64xf32> to vector<128x64xbf16>
      %c0_27 = arith.constant 0 : index
      %c64 = arith.constant 64 : index
      %36 = vector.load %arg7[%c0_27, %c64] : memref<128x128xbf16, #tpu.memory_space<vmem>>, vector<128x64xbf16>
      tpu.vector_store %arg7[%c0_27, %c64], %35 {strides = array<i32>} : memref<128x128xbf16, #tpu.memory_space<vmem>>, vector<128x64xbf16>,
    } else {
    }
    return
  }
  func.func @transform_0(%arg0: i32, %arg1: i32) -> (i32, i32) {
    %c0_i32 = arith.constant 0 : i32
    return %arg0, %arg1 : i32, i32
  }
  func.func @transform_1(%arg0: i32, %arg1: i32) -> (i32, i32) {
    %c0_i32 = arith.constant 0 : i32
    return %arg0, %arg1 : i32, i32
  }
  func.func @transform_2(%arg0: i32, %arg1: i32) -> (i32, i32) {
    %c0_i32 = arith.constant 0 : i32
    %c0_i32_0 = arith.constant 0 : i32
    return %arg1, %c0_i32 : i32, i32
  }
  func.func @transform_3(%arg0: i32, %arg1: i32) -> (i32, i32) {
    %c0_i32 = arith.constant 0 : i32
    %c0_i32_0 = arith.constant 0 : i32
    %c0_i32_1 = arith.constant 0 : i32
    return %c0_i32, %c0_i32_0 : i32, i32
  }
  func.func @transform_4(%arg0: i32, %arg1: i32) -> (i32, i32) {
    %c0_i32 = arith.constant 0 : i32
    %c0_i32_0 = arith.constant 0 : i32
    %c0_i32_1 = arith.constant 0 : i32
    return %c0_i32, %c0_i32_0 : i32, i32
  }
  func.func @transform_5(%arg0: i32, %arg1: i32) -> (i32, i32) {
    %c0_i32 = arith.constant 0 : i32
    %c0_i32_0 = arith.constant 0 : i32
    return %arg0, %c0_i32 : i32, i32
  }
}

module attributes {stable_mosaic.version = 11 : i64} {
  func.func @_linear_kernel(%arg0: i32, %arg1: i32, %arg2: memref<128x128xbf16, #tpu.memory_space<vmem>>, %arg3: memref<128x64xbf16, #tpu.memory_space<vmem>>, %arg4: memref<1x64xf32, #tpu.memory_space<vmem>>, %arg5: memref<128x64xbf16, #tpu.memory_space<vmem>>, %arg6: memref<128x64xf32, #tpu.memory_space<vmem>>) attributes {dimension_semantics = [#tpu.dimension_semantics<parallel>, #tpu.dimension_semantics<arbitrary>], iteration_bounds = array<i64: 1, 1>, scalar_prefetch = 0 : i64, scratch_operands = 1 : i64, tpu.core_type = #tpu.core_type<tc>, window_params = [{transform_indices = @transform_0, window_bounds = array<i64: 128, 128>}, {transform_indices = @transform_1, window_bounds = array<i64: 128, 64>}, {pipeline_mode = #tpu.pipeline_mode<synchronous>, transform_indices = @transform_2, window_bounds = array<i64: 1, 64>}, {transform_indices = @transform_3, window_bounds = array<i64: 128, 64>}]} {
    %c0_i32 = arith.constant 0 : i32
    %0 = arith.cmpi eq, %arg1, %c0_i32 : i32
    %1 = arith.extui %0 : i1 to i32
    %c0_i32_0 = arith.constant 0 : i32
    %2 = arith.cmpi ne, %1, %c0_i32_0 : i32
    scf.if %2 {
      %cst_10 = arith.constant 0.000000e+00 : f32
      %12 = vector.broadcast %cst_10 : f32 to vector<128x64xf32>
      %c0_11 = arith.constant 0 : index
      %c0_12 = arith.constant 0 : index
      %13 = vector.load %arg6[%c0_11, %c0_12] : memref<128x64xf32, #tpu.memory_space<vmem>>, vector<128x64xf32>
      tpu.vector_store %arg6[%c0_11, %c0_12], %12 {strides = array<i32>} : memref<128x64xf32, #tpu.memory_space<vmem>>, vector<128x64xf32>,
    } else {
    }
    %c0 = arith.constant 0 : index
    %c0_1 = arith.constant 0 : index
    %3 = vector.load %arg6[%c0, %c0_1] : memref<128x64xf32, #tpu.memory_space<vmem>>, vector<128x64xf32>
    %c0_2 = arith.constant 0 : index
    %c0_3 = arith.constant 0 : index
    %4 = vector.load %arg2[%c0_2, %c0_3] : memref<128x128xbf16, #tpu.memory_space<vmem>>, vector<128x128xbf16>
    %c0_4 = arith.constant 0 : index
    %c0_5 = arith.constant 0 : index
    %5 = vector.load %arg3[%c0_4, %c0_5] : memref<128x64xbf16, #tpu.memory_space<vmem>>, vector<128x64xbf16>
    %cst = arith.constant dense<0.000000e+00> : vector<128x64xf32>
    %6 = tpu.matmul %4, %5, %cst {dimension_numbers = #tpu.dot_dimension_numbers<[1], [0], [0], [1], [0, 0, 1, 1], [], []>} : vector<128x128xbf16>, vector<128x64xbf16>, vector<128x64xf32> -> vector<128x64xf32>
    %7 = arith.addf %3, %6 : vector<128x64xf32>
    %c0_6 = arith.constant 0 : index
    %c0_7 = arith.constant 0 : index
    %8 = vector.load %arg6[%c0_6, %c0_7] : memref<128x64xf32, #tpu.memory_space<vmem>>, vector<128x64xf32>
    tpu.vector_store %arg6[%c0_6, %c0_7], %7 {strides = array<i32>} : memref<128x64xf32, #tpu.memory_space<vmem>>, vector<128x64xf32>,
    %c0_i32_8 = arith.constant 0 : i32
    %9 = arith.cmpi eq, %arg1, %c0_i32_8 : i32
    %10 = arith.extui %9 : i1 to i32
    %c0_i32_9 = arith.constant 0 : i32
    %11 = arith.cmpi ne, %10, %c0_i32_9 : i32
    scf.if %11 {
      %c0_10 = arith.constant 0 : index
      %c0_11 = arith.constant 0 : index
      %12 = vector.load %arg6[%c0_10, %c0_11] : memref<128x64xf32, #tpu.memory_space<vmem>>, vector<128x64xf32>
      %c0_12 = arith.constant 0 : index
      %c0_13 = arith.constant 0 : index
      %13 = vector.load %arg4[%c0_12, %c0_13] : memref<1x64xf32, #tpu.memory_space<vmem>>, vector<1x64xf32>
      %14 = vector.broadcast %13 : vector<1x64xf32> to vector<128x64xf32>
      %15 = arith.addf %12, %14 : vector<128x64xf32>
      %cst_14 = arith.constant 0.000000e+00 : f32
      %16 = vector.broadcast %cst_14 : f32 to vector<128x64xf32>
      %17 = arith.maximumf %15, %16 : vector<128x64xf32>
      %18 = arith.truncf %17 : vector<128x64xf32> to vector<128x64xbf16>
      %c0_15 = arith.constant 0 : index
      %c0_16 = arith.constant 0 : index
      %19 = vector.load %arg5[%c0_15, %c0_16] : memref<128x64xbf16, #tpu.memory_space<vmem>>, vector<128x64xbf16>
      tpu.vector_store %arg5[%c0_15, %c0_16], %18 {strides = array<i32>} : memref<128x64xbf16, #tpu.memory_space<vmem>>, vector<128x64xbf16>,
    } else {
    }
    return
  }
  func.func @transform_0(%arg0: i32, %arg1: i32) -> (i32, i32) {
    %c0_i32 = arith.constant 0 : i32
    return %arg0, %arg1 : i32, i32
  }
  func.func @transform_1(%arg0: i32, %arg1: i32) -> (i32, i32) {
    %c0_i32 = arith.constant 0 : i32
    %c0_i32_0 = arith.constant 0 : i32
    return %arg1, %c0_i32 : i32, i32
  }
  func.func @transform_2(%arg0: i32, %arg1: i32) -> (i32, i32) {
    %c0_i32 = arith.constant 0 : i32
    %c0_i32_0 = arith.constant 0 : i32
    %c0_i32_1 = arith.constant 0 : i32
    return %c0_i32, %c0_i32_0 : i32, i32
  }
  func.func @transform_3(%arg0: i32, %arg1: i32) -> (i32, i32) {
    %c0_i32 = arith.constant 0 : i32
    %c0_i32_0 = arith.constant 0 : i32
    return %arg0, %c0_i32 : i32, i32
  }
}

module attributes {stable_mosaic.version = 11 : i64} {
  func.func @_hop_final_kernel(%arg0: i32, %arg1: i32, %arg2: memref<128x128xbf16, #tpu.memory_space<vmem>>, %arg3: memref<128x128xbf16, #tpu.memory_space<vmem>>, %arg4: memref<128x128xbf16, #tpu.memory_space<vmem>>, %arg5: memref<128x64xbf16, #tpu.memory_space<vmem>>, %arg6: memref<128x128xbf16, #tpu.memory_space<vmem>>, %arg7: memref<64x128xbf16, #tpu.memory_space<vmem>>, %arg8: memref<128x128xbf16, #tpu.memory_space<vmem>>, %arg9: memref<128x128xbf16, #tpu.memory_space<vmem>>, %arg10: memref<128x128xbf16, #tpu.memory_space<vmem>>, %arg11: memref<1x128xf32, #tpu.memory_space<vmem>>, %arg12: memref<128x128xf32, #tpu.memory_space<vmem>>, %arg13: memref<128x128xf32, #tpu.memory_space<vmem>>, %arg14: memref<128x128xf32, #tpu.memory_space<vmem>>) attributes {dimension_semantics = [#tpu.dimension_semantics<parallel>, #tpu.dimension_semantics<arbitrary>], iteration_bounds = array<i64: 1, 1>, scalar_prefetch = 0 : i64, scratch_operands = 2 : i64, tpu.core_type = #tpu.core_type<tc>, window_params = [{transform_indices = @transform_0, window_bounds = array<i64: 128, 128>}, {transform_indices = @transform_1, window_bounds = array<i64: 128, 128>}, {transform_indices = @transform_2, window_bounds = array<i64: 128, 128>}, {transform_indices = @transform_3, window_bounds = array<i64: 128, 64>}, {transform_indices = @transform_4, window_bounds = array<i64: 128, 128>}, {pipeline_mode = #tpu.pipeline_mode<synchronous>, transform_indices = @transform_5, window_bounds = array<i64: 64, 128>}, {pipeline_mode = #tpu.pipeline_mode<synchronous>, transform_indices = @transform_6, window_bounds = array<i64: 128, 128>}, {pipeline_mode = #tpu.pipeline_mode<synchronous>, transform_indices = @transform_7, window_bounds = array<i64: 128, 128>}, {pipeline_mode = #tpu.pipeline_mode<synchronous>, transform_indices = @transform_8, window_bounds = array<i64: 128, 128>}, {pipeline_mode = #tpu.pipeline_mode<synchronous>, transform_indices = @transform_9, window_bounds = array<i64: 1, 128>}, {transform_indices = @transform_10, window_bounds = array<i64: 128, 128>}]} {
    %c0_i32 = arith.constant 0 : i32
    %0 = arith.cmpi eq, %arg1, %c0_i32 : i32
    %1 = arith.extui %0 : i1 to i32
    %c0_i32_0 = arith.constant 0 : i32
    %2 = arith.cmpi ne, %1, %c0_i32_0 : i32
    scf.if %2 {
      %cst_17 = arith.constant 0.000000e+00 : f32
      %17 = vector.broadcast %cst_17 : f32 to vector<128x128xf32>
      %c0_18 = arith.constant 0 : index
      %c0_19 = arith.constant 0 : index
      %18 = vector.load %arg13[%c0_18, %c0_19] : memref<128x128xf32, #tpu.memory_space<vmem>>, vector<128x128xf32>
      tpu.vector_store %arg13[%c0_18, %c0_19], %17 {strides = array<i32>} : memref<128x128xf32, #tpu.memory_space<vmem>>, vector<128x128xf32>,
      %cst_20 = arith.constant 0.000000e+00 : f32
      %19 = vector.broadcast %cst_20 : f32 to vector<128x128xf32>
      %c0_21 = arith.constant 0 : index
      %c0_22 = arith.constant 0 : index
      %20 = vector.load %arg14[%c0_21, %c0_22] : memref<128x128xf32, #tpu.memory_space<vmem>>, vector<128x128xf32>
      tpu.vector_store %arg14[%c0_21, %c0_22], %19 {strides = array<i32>} : memref<128x128xf32, #tpu.memory_space<vmem>>, vector<128x128xf32>,
    } else {
    }
    %c0 = arith.constant 0 : index
    %c0_1 = arith.constant 0 : index
    %3 = vector.load %arg4[%c0, %c0_1] : memref<128x128xbf16, #tpu.memory_space<vmem>>, vector<128x128xbf16>
    %c0_2 = arith.constant 0 : index
    %c0_3 = arith.constant 0 : index
    %4 = vector.load %arg13[%c0_2, %c0_3] : memref<128x128xf32, #tpu.memory_space<vmem>>, vector<128x128xf32>
    %c0_4 = arith.constant 0 : index
    %c0_5 = arith.constant 0 : index
    %5 = vector.load %arg2[%c0_4, %c0_5] : memref<128x128xbf16, #tpu.memory_space<vmem>>, vector<128x128xbf16>
    %cst = arith.constant dense<0.000000e+00> : vector<128x128xf32>
    %6 = tpu.matmul %5, %3, %cst {dimension_numbers = #tpu.dot_dimension_numbers<[1], [0], [0], [1], [0, 0, 1, 1], [], []>} : vector<128x128xbf16>, vector<128x128xbf16>, vector<128x128xf32> -> vector<128x128xf32>
    %7 = arith.addf %4, %6 : vector<128x128xf32>
    %c0_6 = arith.constant 0 : index
    %c0_7 = arith.constant 0 : index
    %8 = vector.load %arg13[%c0_6, %c0_7] : memref<128x128xf32, #tpu.memory_space<vmem>>, vector<128x128xf32>
    tpu.vector_store %arg13[%c0_6, %c0_7], %7 {strides = array<i32>} : memref<128x128xf32, #tpu.memory_space<vmem>>, vector<128x128xf32>,
    %c0_8 = arith.constant 0 : index
    %c0_9 = arith.constant 0 : index
    %9 = vector.load %arg14[%c0_8, %c0_9] : memref<128x128xf32, #tpu.memory_space<vmem>>, vector<128x128xf32>
    %c0_10 = arith.constant 0 : index
    %c0_11 = arith.constant 0 : index
    %10 = vector.load %arg3[%c0_10, %c0_11] : memref<128x128xbf16, #tpu.memory_space<vmem>>, vector<128x128xbf16>
    %cst_12 = arith.constant dense<0.000000e+00> : vector<128x128xf32>
    %11 = tpu.matmul %10, %3, %cst_12 {dimension_numbers = #tpu.dot_dimension_numbers<[1], [0], [0], [1], [0, 0, 1, 1], [], []>} : vector<128x128xbf16>, vector<128x128xbf16>, vector<128x128xf32> -> vector<128x128xf32>
    %12 = arith.addf %9, %11 : vector<128x128xf32>
    %c0_13 = arith.constant 0 : index
    %c0_14 = arith.constant 0 : index
    %13 = vector.load %arg14[%c0_13, %c0_14] : memref<128x128xf32, #tpu.memory_space<vmem>>, vector<128x128xf32>
    tpu.vector_store %arg14[%c0_13, %c0_14], %12 {strides = array<i32>} : memref<128x128xf32, #tpu.memory_space<vmem>>, vector<128x128xf32>,
    %c0_i32_15 = arith.constant 0 : i32
    %14 = arith.cmpi eq, %arg1, %c0_i32_15 : i32
    %15 = arith.extui %14 : i1 to i32
    %c0_i32_16 = arith.constant 0 : i32
    %16 = arith.cmpi ne, %15, %c0_i32_16 : i32
    scf.if %16 {
      %c0_17 = arith.constant 0 : index
      %c0_18 = arith.constant 0 : index
      %17 = vector.load %arg13[%c0_17, %c0_18] : memref<128x128xf32, #tpu.memory_space<vmem>>, vector<128x128xf32>
      %18 = arith.truncf %17 : vector<128x128xf32> to vector<128x128xbf16>
      %c0_19 = arith.constant 0 : index
      %c0_20 = arith.constant 0 : index
      %19 = vector.load %arg14[%c0_19, %c0_20] : memref<128x128xf32, #tpu.memory_space<vmem>>, vector<128x128xf32>
      %20 = arith.truncf %19 : vector<128x128xf32> to vector<128x128xbf16>
      %c0_21 = arith.constant 0 : index
      %c0_22 = arith.constant 0 : index
      %21 = vector.load %arg5[%c0_21, %c0_22] : memref<128x64xbf16, #tpu.memory_space<vmem>>, vector<128x64xbf16>
      %c0_23 = arith.constant 0 : index
      %c0_24 = arith.constant 0 : index
      %22 = vector.load %arg7[%c0_23, %c0_24] : memref<64x128xbf16, #tpu.memory_space<vmem>>, vector<64x128xbf16>
      %cst_25 = arith.constant dense<0.000000e+00> : vector<128x128xf32>
      %23 = tpu.matmul %21, %22, %cst_25 {dimension_numbers = #tpu.dot_dimension_numbers<[1], [0], [0], [1], [0, 0, 1, 1], [], []>} : vector<128x64xbf16>, vector<64x128xbf16>, vector<128x128xf32> -> vector<128x128xf32>
      %c0_26 = arith.constant 0 : index
      %c0_27 = arith.constant 0 : index
      %24 = vector.load %arg6[%c0_26, %c0_27] : memref<128x128xbf16, #tpu.memory_space<vmem>>, vector<128x128xbf16>
      %c0_28 = arith.constant 0 : index
      %c0_29 = arith.constant 0 : index
      %25 = vector.load %arg8[%c0_28, %c0_29] : memref<128x128xbf16, #tpu.memory_space<vmem>>, vector<128x128xbf16>
      %cst_30 = arith.constant dense<0.000000e+00> : vector<128x128xf32>
      %26 = tpu.matmul %24, %25, %cst_30 {dimension_numbers = #tpu.dot_dimension_numbers<[1], [0], [0], [1], [0, 0, 1, 1], [], []>} : vector<128x128xbf16>, vector<128x128xbf16>, vector<128x128xf32> -> vector<128x128xf32>
      %27 = arith.addf %23, %26 : vector<128x128xf32>
      %c0_31 = arith.constant 0 : index
      %c0_32 = arith.constant 0 : index
      %28 = vector.load %arg9[%c0_31, %c0_32] : memref<128x128xbf16, #tpu.memory_space<vmem>>, vector<128x128xbf16>
      %cst_33 = arith.constant dense<0.000000e+00> : vector<128x128xf32>
      %29 = tpu.matmul %18, %28, %cst_33 {dimension_numbers = #tpu.dot_dimension_numbers<[1], [0], [0], [1], [0, 0, 1, 1], [], []>} : vector<128x128xbf16>, vector<128x128xbf16>, vector<128x128xf32> -> vector<128x128xf32>
      %30 = arith.addf %27, %29 : vector<128x128xf32>
      %c0_34 = arith.constant 0 : index
      %c0_35 = arith.constant 0 : index
      %31 = vector.load %arg10[%c0_34, %c0_35] : memref<128x128xbf16, #tpu.memory_space<vmem>>, vector<128x128xbf16>
      %cst_36 = arith.constant dense<0.000000e+00> : vector<128x128xf32>
      %32 = tpu.matmul %20, %31, %cst_36 {dimension_numbers = #tpu.dot_dimension_numbers<[1], [0], [0], [1], [0, 0, 1, 1], [], []>} : vector<128x128xbf16>, vector<128x128xbf16>, vector<128x128xf32> -> vector<128x128xf32>
      %33 = arith.addf %30, %32 : vector<128x128xf32>
      %c0_37 = arith.constant 0 : index
      %c0_38 = arith.constant 0 : index
      %34 = vector.load %arg11[%c0_37, %c0_38] : memref<1x128xf32, #tpu.memory_space<vmem>>, vector<1x128xf32>
      %35 = vector.broadcast %34 : vector<1x128xf32> to vector<128x128xf32>
      %36 = arith.addf %33, %35 : vector<128x128xf32>
      %c0_39 = arith.constant 0 : index
      %c0_40 = arith.constant 0 : index
      %37 = vector.load %arg12[%c0_39, %c0_40] : memref<128x128xf32, #tpu.memory_space<vmem>>, vector<128x128xf32>
      tpu.vector_store %arg12[%c0_39, %c0_40], %36 {strides = array<i32>} : memref<128x128xf32, #tpu.memory_space<vmem>>, vector<128x128xf32>,
    } else {
    }
    return
  }
  func.func @transform_0(%arg0: i32, %arg1: i32) -> (i32, i32) {
    %c0_i32 = arith.constant 0 : i32
    return %arg0, %arg1 : i32, i32
  }
  func.func @transform_1(%arg0: i32, %arg1: i32) -> (i32, i32) {
    %c0_i32 = arith.constant 0 : i32
    return %arg0, %arg1 : i32, i32
  }
  func.func @transform_2(%arg0: i32, %arg1: i32) -> (i32, i32) {
    %c0_i32 = arith.constant 0 : i32
    %c0_i32_0 = arith.constant 0 : i32
    return %arg1, %c0_i32 : i32, i32
  }
  func.func @transform_3(%arg0: i32, %arg1: i32) -> (i32, i32) {
    %c0_i32 = arith.constant 0 : i32
    %c0_i32_0 = arith.constant 0 : i32
    return %arg0, %c0_i32 : i32, i32
  }
  func.func @transform_4(%arg0: i32, %arg1: i32) -> (i32, i32) {
    %c0_i32 = arith.constant 0 : i32
    %c0_i32_0 = arith.constant 0 : i32
    return %arg0, %c0_i32 : i32, i32
  }
  func.func @transform_5(%arg0: i32, %arg1: i32) -> (i32, i32) {
    %c0_i32 = arith.constant 0 : i32
    %c0_i32_0 = arith.constant 0 : i32
    %c0_i32_1 = arith.constant 0 : i32
    return %c0_i32, %c0_i32_0 : i32, i32
  }
  func.func @transform_6(%arg0: i32, %arg1: i32) -> (i32, i32) {
    %c0_i32 = arith.constant 0 : i32
    %c0_i32_0 = arith.constant 0 : i32
    %c0_i32_1 = arith.constant 0 : i32
    return %c0_i32, %c0_i32_0 : i32, i32
  }
  func.func @transform_7(%arg0: i32, %arg1: i32) -> (i32, i32) {
    %c0_i32 = arith.constant 0 : i32
    %c0_i32_0 = arith.constant 0 : i32
    %c0_i32_1 = arith.constant 0 : i32
    return %c0_i32, %c0_i32_0 : i32, i32
  }
  func.func @transform_8(%arg0: i32, %arg1: i32) -> (i32, i32) {
    %c0_i32 = arith.constant 0 : i32
    %c0_i32_0 = arith.constant 0 : i32
    %c0_i32_1 = arith.constant 0 : i32
    return %c0_i32, %c0_i32_0 : i32, i32
  }
  func.func @transform_9(%arg0: i32, %arg1: i32) -> (i32, i32) {
    %c0_i32 = arith.constant 0 : i32
    %c0_i32_0 = arith.constant 0 : i32
    %c0_i32_1 = arith.constant 0 : i32
    return %c0_i32, %c0_i32_0 : i32, i32
  }
  func.func @transform_10(%arg0: i32, %arg1: i32) -> (i32, i32) {
    %c0_i32 = arith.constant 0 : i32
    %c0_i32_0 = arith.constant 0 : i32
    return %arg0, %c0_i32 : i32, i32
  }
}

</mosaic_0001>

<bundles_post_ra>
// kernel: h2gcn_forward.3
= control target key start
LH: loop header
LB: loop body
LE: loop exit
PB: predicated region body
PF: predicated region fallthrough
CT: control target
= control target key end

     0   :  { %vm19_vm0 = vcmask 523264   ;;  %v583_v1 = vmov 0.0   ;;  %vm432_vm1 = vcmask 519168   ;;  %s769_s1 = inlined_call_operand.vmem [shape: bf16[128,64], index: 1, kind: input, shape index: {}]   ;;  %s770_s0 = inlined_call_operand.vmem [shape: bf16[128,128], index: 0, kind: input, shape index: {}]   ;;  %s771_s2 = inlined_call_operand.vmem [shape: f32[1,64], index: 2, kind: input, shape index: {}]   ;;  %s772_s3 = inlined_call_operand.vmem [shape: bf16[128,64], index: 3, kind: output, shape index: {}]  }
   0x1   :  { %v567_v0 = vld [vmem:[%s769_s1] sm:$0xff]   ;;  %22 = vst.msk [vmem:[#allocation2 + $0x10] sm:$0xff] %vm19_vm0, %v583_v1  ;;  %20 = vst.msk [vmem:[#allocation2] sm:$0xff] %vm19_vm0, %v583_v1  ;;  %v568_v2 = vld [vmem:[%s769_s1 + $0x8] sm:$0xff]  }
   0x2   :  { %21 = vst.msk [vmem:[#allocation2 + $0x8] sm:$0xff] %vm19_vm0, %v583_v1  ;;  %23 = vst.msk [vmem:[#allocation2 + $0x18] sm:$0xff] %vm19_vm0, %v583_v1  ;;  %518 = vmatprep.subr.bf16.mxu0 %v567_v0  ;;  %550 = vmatprep.subr.bf16.mxu1 %v567_v0  ;;  %v569_v3 = vld [vmem:[%s769_s1 + $0x10] sm:$0xff]   ;;  %v570_v4 = vld [vmem:[%s769_s1 + $0x18] sm:$0xff]  }
   0x3   :  { %24 = vst.msk [vmem:[#allocation2 + $0x20] sm:$0xff] %vm19_vm0, %v583_v1  ;;  %25 = vst.msk [vmem:[#allocation2 + $0x28] sm:$0xff] %vm19_vm0, %v583_v1  ;;  %519 = vmatpush3.bf16.msra.mxu0 %v567_v0  ;;  %558 = vmatpush3.bf16.msra.mxu1 %v567_v0  ;;  %v575_v5 = vld [vmem:[%s770_s0] sm:$0xff]   ;;  %v572_v8 = vld [vmem:[%s769_s1 + $0x28] sm:$0xff]  }
   0x4   :  { %26 = vst.msk [vmem:[#allocation2 + $0x30] sm:$0xff] %vm19_vm0, %v583_v1  ;;  %27 = vst.msk [vmem:[#allocation2 + $0x38] sm:$0xff] %vm19_vm0, %v583_v1  ;;  %520 = vmatprep.subr.bf16.mxu0 %v568_v2  ;;  %551 = vmatprep.subr.bf16.mxu1 %v568_v2  ;;  %v576_v6 = vld [vmem:[%s770_s0 + $0x20] sm:$0xff]   ;;  %v573_v9 = vld [vmem:[%s769_s1 + $0x30] sm:$0xff]  }
   0x5   :  { %28 = vst.msk [vmem:[#allocation2 + $0x40] sm:$0xff] %vm19_vm0, %v583_v1  ;;  %29 = vst.msk [vmem:[#allocation2 + $0x48] sm:$0xff] %vm19_vm0, %v583_v1  ;;  %534 = vmatprep.mubr.bf16.mxu0 %v575_v5  ;;  %v571_v7 = vld [vmem:[%s769_s1 + $0x20] sm:$0xff]   ;;  %542 = vmatprep.mubr.bf16.mxu1 %v576_v6  ;;  %v574_v10 = vld [vmem:[%s769_s1 + $0x38] sm:$0xff]  }
   0x6   :  { %30 = vst.msk [vmem:[#allocation2 + $0x50] sm:$0xff] %vm19_vm0, %v583_v1  ;;  %31 = vst.msk [vmem:[#allocation2 + $0x58] sm:$0xff] %vm19_vm0, %v583_v1  ;;  %v577_v11 = vld [vmem:[%s770_s0 + $0x8] sm:$0xff]   ;;  %v579_v13 = vld [vmem:[%s770_s0 + $0x10] sm:$0xff]  }
   0x7   :  { %32 = vst.msk [vmem:[#allocation2 + $0x60] sm:$0xff] %vm19_vm0, %v583_v1  ;;  %33 = vst.msk [vmem:[#allocation2 + $0x68] sm:$0xff] %vm19_vm0, %v583_v1  ;;  %521 = vmatpush3.bf16.msra.mxu0 %v568_v2  ;;  %559 = vmatpush3.bf16.msra.mxu1 %v568_v2  ;;  %v578_v12 = vld [vmem:[%s770_s0 + $0x28] sm:$0xff]   ;;  %v580_v14 = vld [vmem:[%s770_s0 + $0x30] sm:$0xff]  }
   0x8   :  { %34 = vst.msk [vmem:[#allocation2 + $0x70] sm:$0xff] %vm19_vm0, %v583_v1  ;;  %35 = vst.msk [vmem:[#allocation2 + $0x78] sm:$0xff] %vm19_vm0, %v583_v1  ;;  %522 = vmatprep.subr.bf16.mxu0 %v569_v3  ;;  %552 = vmatprep.subr.bf16.mxu1 %v569_v3  ;;  %v581_v15 = vld [vmem:[%s770_s0 + $0x18] sm:$0xff]   ;;  %v38_v17 = vld [vmem:[#allocation2 + $0x10] sm:$0xff] }
   0x9   :  { %v582_v16 = vld [vmem:[%s770_s0 + $0x38] sm:$0xff]   ;;  %v36_v19 = vld [vmem:[#allocation2] sm:$0xff]  ;;  %v37_v29 = vld [vmem:[#allocation2 + $0x8] sm:$0xff] }
   0xa   :  { %v39_v23 = vld [vmem:[#allocation2 + $0x18] sm:$0xff]  ;;  %v40_v43 = vld [vmem:[#allocation2 + $0x20] sm:$0xff]  ;;  %v41_v54 = vld [vmem:[#allocation2 + $0x28] sm:$0xff] }
   0xb   :  { %523 = vmatpush3.bf16.msra.mxu0 %v569_v3  ;;  %560 = vmatpush3.bf16.msra.mxu1 %v569_v3  ;;  %v42_v41 = vld [vmem:[#allocation2 + $0x30] sm:$0xff]  ;;  %v679_v45 = vld [vmem:[%s771_s2] ss:$0 sm:$0xff]  ;;  %v43_v48 = vld [vmem:[#allocation2 + $0x38] sm:$0xff] }
   0xc   :  { %524 = vmatprep.subr.bf16.mxu0 %v570_v4  ;;  %553 = vmatprep.subr.bf16.mxu1 %v570_v4  ;;  %v44_v20 = vld [vmem:[#allocation2 + $0x40] sm:$0xff]  ;;  %v45_v30 = vld [vmem:[#allocation2 + $0x48] sm:$0xff] }
   0xd   :  { %v46_v18 = vld [vmem:[#allocation2 + $0x50] sm:$0xff]  ;;  %v47_v24 = vld [vmem:[#allocation2 + $0x58] sm:$0xff] }
   0xe   :  { %v48_v44 = vld [vmem:[#allocation2 + $0x60] sm:$0xff]  ;;  %v49_v55 = vld [vmem:[#allocation2 + $0x68] sm:$0xff] }
   0xf   :  { %525 = vmatpush3.bf16.msra.mxu0 %v570_v4  ;;  %561 = vmatpush3.bf16.msra.mxu1 %v570_v4  ;;  %v50_v42 = vld [vmem:[#allocation2 + $0x70] sm:$0xff]  ;;  %v51_v49 = vld [vmem:[#allocation2 + $0x78] sm:$0xff] }
  0x10   :  { %526 = vmatprep.subr.bf16.mxu0 %v571_v7  ;;  %554 = vmatprep.subr.bf16.mxu1 %v571_v7 }
  0x13   :  { %527 = vmatpush3.bf16.msra.mxu0 %v571_v7  ;;  %562 = vmatpush3.bf16.msra.mxu1 %v571_v7 }
  0x14   :  { %528 = vmatprep.subr.bf16.mxu0 %v572_v8  ;;  %555 = vmatprep.subr.bf16.mxu1 %v572_v8 }
  0x17   :  { %529 = vmatpush3.bf16.msra.mxu0 %v572_v8  ;;  %563 = vmatpush3.bf16.msra.mxu1 %v572_v8 }
  0x18   :  { %530 = vmatprep.subr.bf16.mxu0 %v573_v9  ;;  %556 = vmatprep.subr.bf16.mxu1 %v573_v9 }
  0x1b   :  { %531 = vmatpush3.bf16.msra.mxu0 %v573_v9  ;;  %564 = vmatpush3.bf16.msra.mxu1 %v573_v9 }
  0x1c   :  { %532 = vmatprep.subr.bf16.mxu0 %v574_v10  ;;  %557 = vmatprep.subr.bf16.mxu1 %v574_v10 }
  0x1f   :  { %533 = vmatpush3.bf16.msra.mxu0 %v574_v10  ;;  %565 = vmatpush3.bf16.msra.mxu1 %v574_v10 }
  0x22   :  { %535 = vmatmul.mubr.bf16.vlgmr.msra.gmra.mrb[0].mxu0 %v577_v11  ;;  %543 = vmatmul.mubr.bf16.vlgmr.msra.gmra.mrb[0].mxu1 %v578_v12 }
  0x23   :  { %538 = vmatprep.mubr.bf16.mxu0 %v579_v13  ;;  %546 = vmatprep.mubr.bf16.mxu1 %v580_v14 }
  0x2a   :  { %539 = vmatmul.mubr.bf16.gmra.mrb[4].mxu0 %v581_v15  ;;  %547 = vmatmul.mubr.bf16.gmra.mrb[4].mxu1 %v582_v16 }
  0xf5   :  { %v536_v21 = vpop.f32.mrb[0].mxu0  ;;  %v544_v22 = vpop.f32.mrb[0].mxu1 }
  0xf6   :  { %v279_v25 = vadd.f32 %v536_v21, %v38_v17  ;;  %v287_v26 = vadd.f32 %v544_v22, %v46_v18  ;;  %v214_v27 = vpop.f32.mrb[1].mxu0  ;;  %v246_v28 = vpop.f32.mrb[1].mxu1 }
  0xf7   :  { %v277_v31 = vadd.f32 %v214_v27, %v36_v19  ;;  %v285_v32 = vadd.f32 %v246_v28, %v44_v20  ;;  %v537_v33 = vpop.f32.mrb[2].mxu0  ;;  %v545_v34 = vpop.f32.mrb[2].mxu1 }
  0xf8   :  { %296 = vst.msk [vmem:[#allocation2 + $0x10] sm:$0xff] %vm19_vm0, %v279_v25  ;;  %304 = vst.msk [vmem:[#allocation2 + $0x50] sm:$0xff] %vm19_vm0, %v287_v26  ;;  %v280_v35 = vadd.f32 %v537_v33, %v39_v23  ;;  %v288_v36 = vadd.f32 %v545_v34, %v47_v24  ;;  %v217_v37 = vpop.f32.mrb[3].mxu0  ;;  %v249_v38 = vpop.f32.mrb[3].mxu1 }
  0xf9   :  { %294 = vst.msk [vmem:[#allocation2] sm:$0xff] %vm19_vm0, %v277_v31  ;;  %302 = vst.msk [vmem:[#allocation2 + $0x40] sm:$0xff] %vm19_vm0, %v285_v32  ;;  %v278_v39 = vadd.f32 %v217_v37, %v37_v29  ;;  %v286_v40 = vadd.f32 %v249_v38, %v45_v30 }
  0xfa   :  { %297 = vst.msk [vmem:[#allocation2 + $0x18] sm:$0xff] %vm19_vm0, %v280_v35  ;;  %305 = vst.msk [vmem:[#allocation2 + $0x58] sm:$0xff] %vm19_vm0, %v288_v36 }
  0xfb   :  { %295 = vst.msk [vmem:[#allocation2 + $0x8] sm:$0xff] %vm19_vm0, %v278_v39  ;;  %303 = vst.msk [vmem:[#allocation2 + $0x48] sm:$0xff] %vm19_vm0, %v286_v40 }
  0xfd   :  { %v540_v46 = vpop.f32.mrb[4].mxu0  ;;  %v548_v47 = vpop.f32.mrb[4].mxu1 }
  0xfe   :  { %v283_v50 = vadd.f32 %v540_v46, %v42_v41  ;;  %v291_v51 = vadd.f32 %v548_v47, %v50_v42  ;;  %v230_v52 = vpop.f32.mrb[5].mxu0  ;;  %v262_v53 = vpop.f32.mrb[5].mxu1 }
  0xff   :  { %v315_v56 = vld [vmem:[#allocation2 + $0x10] sm:$0xff]  ;;  %v281_v58 = vadd.f32 %v230_v52, %v40_v43  ;;  %v289_v59 = vadd.f32 %v262_v53, %v48_v44  ;;  %v541_v60 = vpop.f32.mrb[6].mxu0  ;;  %v549_v61 = vpop.f32.mrb[6].mxu1 }
 0x100   :  { %v323_v57 = vld [vmem:[#allocation2 + $0x50] sm:$0xff]  ;;  %v338_v62 = vadd.f32 %v679_v45, %v315_v56  ;;  %v313_v0 = vld [vmem:[#allocation2] sm:$0xff]  ;;  %300 = vst.msk [vmem:[#allocation2 + $0x30] sm:$0xff] %vm19_vm0, %v283_v50  ;;  %308 = vst.msk [vmem:[#allocation2 + $0x70] sm:$0xff] %vm19_vm0, %v291_v51  ;;  %v284_v2 = vadd.f32 %v541_v60, %v43_v48  ;;  %v292_v3 = vadd.f32 %v549_v61, %v51_v49  ;;  %v233_v4 = vpop.f32.mrb[7].mxu0  ;;  %v265_v5 = vpop.f32.mrb[7].mxu1 }
 0x101   :  { %v346_v63 = vadd.f32 %v679_v45, %v323_v57  ;;  %v321_v1 = vld [vmem:[#allocation2 + $0x40] sm:$0xff]  ;;  %v336_v6 = vadd.f32 %v679_v45, %v313_v0  ;;  %v316_v8 = vld [vmem:[#allocation2 + $0x18] sm:$0xff]  ;;  %298 = vst.msk [vmem:[#allocation2 + $0x20] sm:$0xff] %vm19_vm0, %v281_v58  ;;  %306 = vst.msk [vmem:[#allocation2 + $0x60] sm:$0xff] %vm19_vm0, %v289_v59  ;;  %v282_v10 = vadd.f32 %v233_v4, %v41_v54 }
 0x102   :  { %v344_v7 = vadd.f32 %v679_v45, %v321_v1  ;;  %v324_v9 = vld [vmem:[#allocation2 + $0x58] sm:$0xff]  ;;  %v290_v11 = vadd.f32 %v265_v5, %v49_v55  ;;  %v354_v12 = vmax.f32 %v338_v62, 0.0  ;;  %v339_v14 = vadd.f32 %v679_v45, %v316_v8  ;;  %v314_v16 = vld [vmem:[#allocation2 + $0x8] sm:$0xff]  ;;  %301 = vst.msk [vmem:[#allocation2 + $0x38] sm:$0xff] %vm19_vm0, %v284_v2  ;;  %309 = vst.msk [vmem:[#allocation2 + $0x78] sm:$0xff] %vm19_vm0, %v292_v3 }
 0x103   :  { %v362_v13 = vmax.f32 %v346_v63, 0.0  ;;  %v347_v15 = vadd.f32 %v679_v45, %v324_v9  ;;  %v322_v17 = vld [vmem:[#allocation2 + $0x48] sm:$0xff]  ;;  %v352_v18 = vmax.f32 %v336_v6, 0.0  ;;  %v337_v20 = vadd.f32 %v679_v45, %v314_v16  ;;  %299 = vst.msk [vmem:[#allocation2 + $0x28] sm:$0xff] %vm19_vm0, %v282_v10 }
 0x104   :  { %v360_v19 = vmax.f32 %v344_v7, 0.0  ;;  %v345_v21 = vadd.f32 %v679_v45, %v322_v17  ;;  %307 = vst.msk [vmem:[#allocation2 + $0x68] sm:$0xff] %vm19_vm0, %v290_v11  ;;  %v488_v22 = vpack.c.bf16 %v354_v12, %v354_v12  ;;  %v355_v24 = vmax.f32 %v339_v14, 0.0 }
 0x105   :  { %v496_v23 = vpack.c.bf16 %v362_v13, %v362_v13  ;;  %v363_v25 = vmax.f32 %v347_v15, 0.0  ;;  %v486_v26 = vpack.c.bf16 %v352_v18, %v352_v18  ;;  %v353_v28 = vmax.f32 %v337_v20, 0.0 }
 0x106   :  { %v494_v27 = vpack.c.bf16 %v360_v19, %v360_v19  ;;  %v361_v29 = vmax.f32 %v345_v21, 0.0  ;;  %435 = vst.msk [vmem:[%s772_s3 + $0x8] sm:$0xf] %vm432_vm1, %v488_v22  ;;  %v489_v30 = vpack.c.bf16 %v355_v24, %v355_v24 }
 0x107   :  { %443 = vst.msk [vmem:[%s772_s3 + $0x28] sm:$0xf] %vm432_vm1, %v496_v23  ;;  %v497_v31 = vpack.c.bf16 %v363_v25, %v363_v25  ;;  %433 = vst.msk [vmem:[%s772_s3] sm:$0xf] %vm432_vm1, %v486_v26  ;;  %v487_v32 = vpack.c.bf16 %v353_v28, %v353_v28  ;;  %v319_v34 = vld [vmem:[#allocation2 + $0x30] sm:$0xff] }
 0x108   :  { %441 = vst.msk [vmem:[%s772_s3 + $0x20] sm:$0xf] %vm432_vm1, %v494_v27  ;;  %v495_v33 = vpack.c.bf16 %v361_v29, %v361_v29  ;;  %v327_v35 = vld [vmem:[#allocation2 + $0x70] sm:$0xff]  ;;  %436 = vst.msk [vmem:[%s772_s3 + $0xc] sm:$0xf] %vm432_vm1, %v489_v30  ;;  %v342_v36 = vadd.f32 %v679_v45, %v319_v34  ;;  %v317_v38 = vld [vmem:[#allocation2 + $0x20] sm:$0xff] }
 0x109   :  { %444 = vst.msk [vmem:[%s772_s3 + $0x2c] sm:$0xf] %vm432_vm1, %v497_v31  ;;  %v350_v37 = vadd.f32 %v679_v45, %v327_v35  ;;  %v325_v39 = vld [vmem:[#allocation2 + $0x60] sm:$0xff]  ;;  %434 = vst.msk [vmem:[%s772_s3 + $0x4] sm:$0xf] %vm432_vm1, %v487_v32  ;;  %v340_v40 = vadd.f32 %v679_v45, %v317_v38  ;;  %v320_v42 = vld [vmem:[#allocation2 + $0x38] sm:$0xff] }
 0x10a   :  { %442 = vst.msk [vmem:[%s772_s3 + $0x24] sm:$0xf] %vm432_vm1, %v495_v33  ;;  %v348_v41 = vadd.f32 %v679_v45, %v325_v39  ;;  %v328_v43 = vld [vmem:[#allocation2 + $0x78] sm:$0xff]  ;;  %v358_v44 = vmax.f32 %v342_v36, 0.0  ;;  %v343_v47 = vadd.f32 %v679_v45, %v320_v42  ;;  %v318_v49 = vld [vmem:[#allocation2 + $0x28] sm:$0xff] }
 0x10b   :  { %v366_v46 = vmax.f32 %v350_v37, 0.0  ;;  %v351_v48 = vadd.f32 %v679_v45, %v328_v43  ;;  %v326_v50 = vld [vmem:[#allocation2 + $0x68] sm:$0xff]  ;;  %v356_v51 = vmax.f32 %v340_v40, 0.0  ;;  %v341_v53 = vadd.f32 %v679_v45, %v318_v49 }
 0x10c   :  { %v364_v52 = vmax.f32 %v348_v41, 0.0  ;;  %v349_v54 = vadd.f32 %v679_v45, %v326_v50  ;;  %v492_v55 = vpack.c.bf16 %v358_v44, %v358_v44  ;;  %v359_v57 = vmax.f32 %v343_v47, 0.0 }
 0x10d   :  { %v500_v56 = vpack.c.bf16 %v366_v46, %v366_v46  ;;  %v367_v58 = vmax.f32 %v351_v48, 0.0  ;;  %v490_v59 = vpack.c.bf16 %v356_v51, %v356_v51  ;;  %v357_v61 = vmax.f32 %v341_v53, 0.0 }
 0x10e   :  { %v498_v60 = vpack.c.bf16 %v364_v52, %v364_v52  ;;  %v365_v62 = vmax.f32 %v349_v54, 0.0  ;;  %439 = vst.msk [vmem:[%s772_s3 + $0x18] sm:$0xf] %vm432_vm1, %v492_v55  ;;  %v493_v63 = vpack.c.bf16 %v359_v57, %v359_v57 }
 0x10f   :  { %447 = vst.msk [vmem:[%s772_s3 + $0x38] sm:$0xf] %vm432_vm1, %v500_v56  ;;  %v501_v45 = vpack.c.bf16 %v367_v58, %v367_v58  ;;  %437 = vst.msk [vmem:[%s772_s3 + $0x10] sm:$0xf] %vm432_vm1, %v490_v59  ;;  %v491_v0 = vpack.c.bf16 %v357_v61, %v357_v61 }
 0x110   :  { %445 = vst.msk [vmem:[%s772_s3 + $0x30] sm:$0xf] %vm432_vm1, %v498_v60  ;;  %v499_v1 = vpack.c.bf16 %v365_v62, %v365_v62  ;;  %440 = vst.msk [vmem:[%s772_s3 + $0x1c] sm:$0xf] %vm432_vm1, %v493_v63 }
 0x111   :  { %448 = vst.msk [vmem:[%s772_s3 + $0x3c] sm:$0xf] %vm432_vm1, %v501_v45  ;;  %438 = vst.msk [vmem:[%s772_s3 + $0x14] sm:$0xf] %vm432_vm1, %v491_v0 }
 0x112   :  { %446 = vst.msk [vmem:[%s772_s3 + $0x34] sm:$0xf] %vm432_vm1, %v499_v1 }

// kernel: h2gcn_forward.4
= control target key start
LH: loop header
LB: loop body
LE: loop exit
PB: predicated region body
PF: predicated region fallthrough
CT: control target
= control target key end

     0   :  { %vm25_vm0 = vcmask 523264   ;;  %v1070_v1 = vmov 0.0   ;;  %s1071_s9 = smov 64   ;;  %vm670_vm1 = vcmask 519168   ;;  %vm837_vm2 = vcmask 1043968   ;;  %s1472_s2 = inlined_call_operand.vmem [shape: bf16[128,64], index: 2, kind: input, shape index: {}]   ;;  %s1473_s1 = inlined_call_operand.vmem [shape: bf16[128,128], index: 1, kind: input, shape index: {}]   ;;  %s1474_s3 = inlined_call_operand.vmem [shape: f32[1,128], index: 3, kind: input, shape index: {}]   ;;  %s1475_s0 = inlined_call_operand.vmem [shape: bf16[128,128], index: 0, kind: input, shape index: {}]   ;;  %s1476_s4 = inlined_call_operand.vmem [shape: f32[1,128], index: 4, kind: input, shape index: {}]   ;;  %s1477_s5 = inlined_call_operand.vmem [shape: bf16[128,128], index: 5, kind: output, shape index: {}]  }
   0x1   :  { %v1046_v0 = vld [vmem:[%s1472_s2] sm:$0xff]   ;;  %44 = vst.msk [vmem:[#allocation3 + $0x10] sm:$0xff] %vm25_vm0, %v1070_v1  ;;  %26 = vst.msk [vmem:[#allocation2] sm:$0xff] %vm25_vm0, %v1070_v1  ;;  %v1047_v2 = vld [vmem:[%s1472_s2 + $0x8] sm:$0xff]  }
   0x2   :  { %27 = vst.msk [vmem:[#allocation2 + $0x8] sm:$0xff] %vm25_vm0, %v1070_v1  ;;  %28 = vst.msk [vmem:[#allocation2 + $0x10] sm:$0xff] %vm25_vm0, %v1070_v1  ;;  %1012 = vmatprep.subr.bf16.mxu1 %v1046_v0  ;;  %980 = vmatprep.subr.bf16.mxu0 %v1046_v0  ;;  %v1048_v3 = vld [vmem:[%s1472_s2 + $0x10] sm:$0xff]   ;;  %v1049_v4 = vld [vmem:[%s1472_s2 + $0x18] sm:$0xff]  }
   0x3   :  { %29 = vst.msk [vmem:[#allocation2 + $0x18] sm:$0xff] %vm25_vm0, %v1070_v1  ;;  %30 = vst.msk [vmem:[#allocation2 + $0x20] sm:$0xff] %vm25_vm0, %v1070_v1  ;;  %1013 = vmatpush3.bf16.msra.mxu1 %v1046_v0  ;;  %981 = vmatpush3.bf16.msra.mxu0 %v1046_v0  ;;  %v1054_v5 = vld [vmem:[%s1473_s1] sm:$0xff]   ;;  %v1051_v7 = vld [vmem:[%s1472_s2 + $0x28] sm:$0xff]  }
   0x4   :  { %31 = vst.msk [vmem:[#allocation2 + $0x28] sm:$0xff] %vm25_vm0, %v1070_v1  ;;  %32 = vst.msk [vmem:[#allocation2 + $0x30] sm:$0xff] %vm25_vm0, %v1070_v1  ;;  %1014 = vmatprep.subr.bf16.mxu1 %v1047_v2  ;;  %982 = vmatprep.subr.bf16.mxu0 %v1047_v2  ;;  %v1050_v6 = vld [vmem:[%s1472_s2 + $0x20] sm:$0xff]   ;;  %v1052_v11 = vld [vmem:[%s1472_s2 + $0x30] sm:$0xff]  }
   0x5   :  { %33 = vst.msk [vmem:[#allocation2 + $0x38] sm:$0xff] %vm25_vm0, %v1070_v1  ;;  %34 = vst.msk [vmem:[#allocation2 + $0x40] sm:$0xff] %vm25_vm0, %v1070_v1  ;;  %1028 = vmatprep.mubr.bf16.mxu1 %v1054_v5  ;;  %v1158_v8 = vld [vmem:[%s1474_s3] ss:$0 sm:$0xff]  ;;  %v1053_v12 = vld [vmem:[%s1472_s2 + $0x38] sm:$0xff]  }
   0x6   :  { %35 = vst.msk [vmem:[#allocation2 + $0x48] sm:$0xff] %vm25_vm0, %v1070_v1  ;;  %36 = vst.msk [vmem:[#allocation2 + $0x50] sm:$0xff] %vm25_vm0, %v1070_v1  ;;  %703 = vrot.lane.b32.xlu0 %v1158_v8, %s1071_s9  ;;  %v1062_v9 = vld [vmem:[%s1475_s0] sm:$0xff]   ;;  %v1055_v13 = vld [vmem:[%s1473_s1 + $0x8] sm:$0xff]  }
   0x7   :  { %37 = vst.msk [vmem:[#allocation2 + $0x58] sm:$0xff] %vm25_vm0, %v1070_v1  ;;  %38 = vst.msk [vmem:[#allocation2 + $0x60] sm:$0xff] %vm25_vm0, %v1070_v1  ;;  %1015 = vmatpush3.bf16.msra.mxu1 %v1047_v2  ;;  %983 = vmatpush3.bf16.msra.mxu0 %v1047_v2  ;;  %v1168_v10 = vld [vmem:[%s1476_s4] ss:$0 sm:$0xff]  ;;  %v1063_v14 = vld [vmem:[%s1475_s0 + $0x8] sm:$0xff]  }
   0x8   :  { %39 = vst.msk [vmem:[#allocation2 + $0x68] sm:$0xff] %vm25_vm0, %v1070_v1  ;;  %40 = vst.msk [vmem:[#allocation2 + $0x70] sm:$0xff] %vm25_vm0, %v1070_v1  ;;  %1016 = vmatprep.subr.bf16.mxu1 %v1048_v3  ;;  %984 = vmatprep.subr.bf16.mxu0 %v1048_v3  ;;  %v1056_v15 = vld [vmem:[%s1473_s1 + $0x10] sm:$0xff]   ;;  %v1057_v17 = vld [vmem:[%s1473_s1 + $0x18] sm:$0xff]  }
   0x9   :  { %41 = vst.msk [vmem:[#allocation2 + $0x78] sm:$0xff] %vm25_vm0, %v1070_v1  ;;  %42 = vst.msk [vmem:[#allocation3] sm:$0xff] %vm25_vm0, %v1070_v1  ;;  %996 = vmatprep.mubr.bf16.mxu0 %v1062_v9  ;;  %v1064_v16 = vld [vmem:[%s1475_s0 + $0x10] sm:$0xff]   ;;  %v1065_v18 = vld [vmem:[%s1475_s0 + $0x18] sm:$0xff]  }
   0xa   :  { %43 = vst.msk [vmem:[#allocation3 + $0x8] sm:$0xff] %vm25_vm0, %v1070_v1  ;;  %45 = vst.msk [vmem:[#allocation3 + $0x18] sm:$0xff] %vm25_vm0, %v1070_v1  ;;  %722 = vrot.lane.b32.xlu0 %v1168_v10, %s1071_s9  ;;  %v1058_v19 = vld [vmem:[%s1473_s1 + $0x20] sm:$0xff]   ;;  %v1059_v21 = vld [vmem:[%s1473_s1 + $0x28] sm:$0xff]  }
   0xb   :  { %46 = vst.msk [vmem:[#allocation3 + $0x20] sm:$0xff] %vm25_vm0, %v1070_v1  ;;  %47 = vst.msk [vmem:[#allocation3 + $0x28] sm:$0xff] %vm25_vm0, %v1070_v1  ;;  %1017 = vmatpush3.bf16.msra.mxu1 %v1048_v3  ;;  %985 = vmatpush3.bf16.msra.mxu0 %v1048_v3  ;;  %v1066_v20 = vld [vmem:[%s1475_s0 + $0x20] sm:$0xff]   ;;  %v1067_v22 = vld [vmem:[%s1475_s0 + $0x28] sm:$0xff]  }
   0xc   :  { %48 = vst.msk [vmem:[#allocation3 + $0x30] sm:$0xff] %vm25_vm0, %v1070_v1  ;;  %49 = vst.msk [vmem:[#allocation3 + $0x38] sm:$0xff] %vm25_vm0, %v1070_v1  ;;  %1018 = vmatprep.subr.bf16.mxu1 %v1049_v4  ;;  %986 = vmatprep.subr.bf16.mxu0 %v1049_v4  ;;  %v1060_v23 = vld [vmem:[%s1473_s1 + $0x30] sm:$0xff]   ;;  %v1061_v25 = vld [vmem:[%s1473_s1 + $0x38] sm:$0xff]  }
   0xd   :  { %50 = vst.msk [vmem:[#allocation3 + $0x40] sm:$0xff] %vm25_vm0, %v1070_v1  ;;  %51 = vst.msk [vmem:[#allocation3 + $0x48] sm:$0xff] %vm25_vm0, %v1070_v1  ;;  %v1068_v24 = vld [vmem:[%s1475_s0 + $0x30] sm:$0xff]   ;;  %v1069_v26 = vld [vmem:[%s1475_s0 + $0x38] sm:$0xff]  }
   0xe   :  { %52 = vst.msk [vmem:[#allocation3 + $0x50] sm:$0xff] %vm25_vm0, %v1070_v1  ;;  %53 = vst.msk [vmem:[#allocation3 + $0x58] sm:$0xff] %vm25_vm0, %v1070_v1  ;;  %v334_v27 = vld [vmem:[#allocation3 + $0x10] sm:$0xff]  ;;  %v74_v31 = vld [vmem:[#allocation2] sm:$0xff] }
   0xf   :  { %54 = vst.msk [vmem:[#allocation3 + $0x60] sm:$0xff] %vm25_vm0, %v1070_v1  ;;  %55 = vst.msk [vmem:[#allocation3 + $0x68] sm:$0xff] %vm25_vm0, %v1070_v1  ;;  %1019 = vmatpush3.bf16.msra.mxu1 %v1049_v4  ;;  %987 = vmatpush3.bf16.msra.mxu0 %v1049_v4  ;;  %v76_v28 = vld [vmem:[#allocation2 + $0x10] sm:$0xff]  ;;  %v77_v35 = vld [vmem:[#allocation2 + $0x18] sm:$0xff] }
  0x10   :  { %56 = vst.msk [vmem:[#allocation3 + $0x70] sm:$0xff] %vm25_vm0, %v1070_v1  ;;  %57 = vst.msk [vmem:[#allocation3 + $0x78] sm:$0xff] %vm25_vm0, %v1070_v1  ;;  %1020 = vmatprep.subr.bf16.mxu1 %v1050_v6  ;;  %988 = vmatprep.subr.bf16.mxu0 %v1050_v6  ;;  %v332_v29 = vld [vmem:[#allocation3] sm:$0xff]  ;;  %v75_v41 = vld [vmem:[#allocation2 + $0x8] sm:$0xff] }
  0x11   :  { %v335_v33 = vld [vmem:[#allocation3 + $0x18] sm:$0xff]  ;;  %v333_v38 = vld [vmem:[#allocation3 + $0x8] sm:$0xff]  ;;  %v80_v53 = vld [vmem:[#allocation2 + $0x30] sm:$0xff] }
  0x12   :  { %v336_v54 = vld [vmem:[#allocation3 + $0x20] sm:$0xff]  ;;  %v81_v60 = vld [vmem:[#allocation2 + $0x38] sm:$0xff]  ;;  %v337_v63 = vld [vmem:[#allocation3 + $0x28] sm:$0xff] }
  0x13   :  { %1021 = vmatpush3.bf16.msra.mxu1 %v1050_v6  ;;  %989 = vmatpush3.bf16.msra.mxu0 %v1050_v6  ;;  %v338_v52 = vld [vmem:[#allocation3 + $0x30] sm:$0xff]  ;;  %v78_v56 = vld [vmem:[#allocation2 + $0x20] sm:$0xff]  ;;  %v339_v58 = vld [vmem:[#allocation3 + $0x38] sm:$0xff] }
  0x14   :  { %1022 = vmatprep.subr.bf16.mxu1 %v1051_v7  ;;  %990 = vmatprep.subr.bf16.mxu0 %v1051_v7  ;;  %v79_v2 = vld [vmem:[#allocation2 + $0x28] sm:$0xff] }
  0x17   :  { %1023 = vmatpush3.bf16.msra.mxu1 %v1051_v7  ;;  %991 = vmatpush3.bf16.msra.mxu0 %v1051_v7 }
  0x18   :  { %1024 = vmatprep.subr.bf16.mxu1 %v1052_v11  ;;  %992 = vmatprep.subr.bf16.mxu0 %v1052_v11 }
  0x1b   :  { %1025 = vmatpush3.bf16.msra.mxu1 %v1052_v11  ;;  %993 = vmatpush3.bf16.msra.mxu0 %v1052_v11 }
  0x1c   :  { %1026 = vmatprep.subr.bf16.mxu1 %v1053_v12  ;;  %994 = vmatprep.subr.bf16.mxu0 %v1053_v12 }
  0x1f   :  { %1027 = vmatpush3.bf16.msra.mxu1 %v1053_v12  ;;  %995 = vmatpush3.bf16.msra.mxu0 %v1053_v12 }
  0x22   :  { %1029 = vmatmul.mubr.bf16.vlgmr.msra.gmra.mrb[0].mxu1 %v1055_v13  ;;  %997 = vmatmul.mubr.bf16.vlgmr.msra.gmra.mrb[0].mxu0 %v1063_v14 }
  0x23   :  { %1032 = vmatprep.mubr.bf16.mxu1 %v1056_v15  ;;  %1000 = vmatprep.mubr.bf16.mxu0 %v1064_v16 }
  0x2a   :  { %1033 = vmatmul.mubr.bf16.gmra.mrb[4].mxu1 %v1057_v17  ;;  %1001 = vmatmul.mubr.bf16.gmra.mrb[4].mxu0 %v1065_v18 }
  0x2b   :  { %1036 = vmatprep.mubr.bf16.mxu1 %v1058_v19  ;;  %1004 = vmatprep.mubr.bf16.mxu0 %v1066_v20 }
  0x32   :  { %1037 = vmatmul.mubr.bf16.gmra.mrb[8].mxu1 %v1059_v21  ;;  %1005 = vmatmul.mubr.bf16.gmra.mrb[8].mxu0 %v1067_v22 }
  0x33   :  { %1040 = vmatprep.mubr.bf16.mxu1 %v1060_v23  ;;  %1008 = vmatprep.mubr.bf16.mxu0 %v1068_v24 }
  0x3a   :  { %1041 = vmatmul.mubr.bf16.gmra.mrb[12].mxu1 %v1061_v25  ;;  %1009 = vmatmul.mubr.bf16.gmra.mrb[12].mxu0 %v1069_v26 }
  0x78   :  { %v1220_v30 = vpop.permute.xlu0 %703 }
  0x7c   :  { %v1230_v55 = vpop.permute.xlu0 %722 }
  0xf5   :  { %v1030_v32 = vpop.f32.mrb[0].mxu1  ;;  %v998_v34 = vpop.f32.mrb[0].mxu0 }
  0xf6   :  { %v511_v36 = vadd.f32 %v1030_v32, %v334_v27  ;;  %v446_v37 = vpop.f32.mrb[1].mxu1  ;;  %v301_v39 = vadd.f32 %v998_v34, %v76_v28  ;;  %v236_v40 = vpop.f32.mrb[1].mxu0  ;;  %v342_v32 = vld [vmem:[#allocation3 + $0x50] sm:$0xff] }
  0xf7   :  { %v509_v42 = vadd.f32 %v446_v37, %v332_v29  ;;  %v1031_v43 = vpop.f32.mrb[2].mxu1  ;;  %v299_v44 = vadd.f32 %v236_v40, %v74_v31  ;;  %v999_v45 = vpop.f32.mrb[2].mxu0 }
  0xf8   :  { %527 = vst.msk [vmem:[#allocation3 + $0x10] sm:$0xff] %vm25_vm0, %v511_v36  ;;  %v512_v46 = vadd.f32 %v1031_v43, %v335_v33  ;;  %v449_v47 = vpop.f32.mrb[3].mxu1  ;;  %318 = vst.msk [vmem:[#allocation2 + $0x10] sm:$0xff] %vm25_vm0, %v301_v39  ;;  %v302_v48 = vadd.f32 %v999_v45, %v77_v35  ;;  %v239_v49 = vpop.f32.mrb[3].mxu0  ;;  %v84_v35 = vld [vmem:[#allocation2 + $0x50] sm:$0xff]  ;;  %v340_v39 = vld [vmem:[#allocation3 + $0x40] sm:$0xff] }
  0xf9   :  { %525 = vst.msk [vmem:[#allocation3] sm:$0xff] %vm25_vm0, %v509_v42  ;;  %v510_v50 = vadd.f32 %v449_v47, %v333_v38  ;;  %316 = vst.msk [vmem:[#allocation2] sm:$0xff] %vm25_vm0, %v299_v44  ;;  %v300_v51 = vadd.f32 %v239_v49, %v75_v41  ;;  %v82_v42 = vld [vmem:[#allocation2 + $0x40] sm:$0xff]  ;;  %v85_v49 = vld [vmem:[#allocation2 + $0x58] sm:$0xff] }
  0xfa   :  { %528 = vst.msk [vmem:[#allocation3 + $0x18] sm:$0xff] %vm25_vm0, %v512_v46  ;;  %319 = vst.msk [vmem:[#allocation2 + $0x18] sm:$0xff] %vm25_vm0, %v302_v48  ;;  %v343_v46 = vld [vmem:[#allocation3 + $0x58] sm:$0xff] }
  0xfb   :  { %526 = vst.msk [vmem:[#allocation3 + $0x8] sm:$0xff] %vm25_vm0, %v510_v50  ;;  %317 = vst.msk [vmem:[#allocation2 + $0x8] sm:$0xff] %vm25_vm0, %v300_v51 }
  0xfd   :  { %v1034_v57 = vpop.f32.mrb[4].mxu1  ;;  %v1002_v59 = vpop.f32.mrb[4].mxu0 }
  0xfe   :  { %v515_v61 = vadd.f32 %v1034_v57, %v338_v52  ;;  %v462_v62 = vpop.f32.mrb[5].mxu1  ;;  %v305_v0 = vadd.f32 %v1002_v59, %v80_v53  ;;  %v252_v1 = vpop.f32.mrb[5].mxu0  ;;  %v341_v53 = vld [vmem:[#allocation3 + $0x48] sm:$0xff] }
  0xff   :  { %v513_v3 = vadd.f32 %v462_v62, %v336_v54  ;;  %v1035_v4 = vpop.f32.mrb[6].mxu1  ;;  %v689_v5 = vld [vmem:[#allocation3 + $0x10] sm:$0xff]  ;;  %v303_v6 = vadd.f32 %v252_v1, %v78_v56  ;;  %v1003_v7 = vpop.f32.mrb[6].mxu0  ;;  %v83_v59 = vld [vmem:[#allocation2 + $0x48] sm:$0xff] }
 0x100   :  { %v548_v9 = vld [vmem:[#allocation2 + $0x10] sm:$0xff]  ;;  %531 = vst.msk [vmem:[#allocation3 + $0x30] sm:$0xff] %vm25_vm0, %v515_v61  ;;  %v516_v11 = vadd.f32 %v1035_v4, %v339_v58  ;;  %v465_v12 = vpop.f32.mrb[7].mxu1  ;;  %v708_v13 = vmul.f32 %v1220_v30, %v689_v5  ;;  %v687_v14 = vld [vmem:[#allocation3] sm:$0xff]  ;;  %322 = vst.msk [vmem:[#allocation2 + $0x30] sm:$0xff] %vm25_vm0, %v305_v0  ;;  %v306_v15 = vadd.f32 %v1003_v7, %v81_v60  ;;  %v255_v16 = vpop.f32.mrb[7].mxu0 }
 0x101   :  { %v570_v17 = vmul.f32 %v1158_v8, %v548_v9  ;;  %v546_v18 = vld [vmem:[#allocation2] sm:$0xff]  ;;  %529 = vst.msk [vmem:[#allocation3 + $0x20] sm:$0xff] %vm25_vm0, %v513_v3  ;;  %v514_v19 = vadd.f32 %v465_v12, %v337_v63  ;;  %v706_v20 = vmul.f32 %v1220_v30, %v687_v14  ;;  %v690_v21 = vld [vmem:[#allocation3 + $0x18] sm:$0xff]  ;;  %320 = vst.msk [vmem:[#allocation2 + $0x20] sm:$0xff] %vm25_vm0, %v303_v6 }
 0x102   :  { %v304_v22 = vadd.f32 %v255_v16, %v79_v2  ;;  %v568_v23 = vmul.f32 %v1158_v8, %v546_v18  ;;  %v549_v24 = vld [vmem:[#allocation2 + $0x18] sm:$0xff]  ;;  %532 = vst.msk [vmem:[#allocation3 + $0x38] sm:$0xff] %vm25_vm0, %v516_v11  ;;  %v727_v25 = vadd.f32 %v1230_v55, %v708_v13  ;;  %v709_v26 = vmul.f32 %v1220_v30, %v690_v21  ;;  %v688_v27 = vld [vmem:[#allocation3 + $0x8] sm:$0xff] }
 0x103   :  { %323 = vst.msk [vmem:[#allocation2 + $0x38] sm:$0xff] %vm25_vm0, %v306_v15  ;;  %v592_v28 = vadd.f32 %v1168_v10, %v570_v17  ;;  %v571_v29 = vmul.f32 %v1158_v8, %v549_v24  ;;  %v547_v31 = vld [vmem:[#allocation2 + $0x8] sm:$0xff]  ;;  %530 = vst.msk [vmem:[#allocation3 + $0x28] sm:$0xff] %vm25_vm0, %v514_v19  ;;  %v725_v33 = vadd.f32 %v1230_v55, %v706_v20 }
 0x104   :  { %v707_v34 = vmul.f32 %v1220_v30, %v688_v27  ;;  %321 = vst.msk [vmem:[#allocation2 + $0x28] sm:$0xff] %vm25_vm0, %v304_v22  ;;  %v590_v36 = vadd.f32 %v1168_v10, %v568_v23  ;;  %v569_v37 = vmul.f32 %v1158_v8, %v547_v31  ;;  %v934_v38 = vpack.c.bf16 %v727_v25, %v727_v25 }
 0x105   :  { %v728_v40 = vadd.f32 %v1230_v55, %v709_v26  ;;  %v918_v41 = vpack.c.bf16 %v592_v28, %v592_v28  ;;  %v593_v43 = vadd.f32 %v1168_v10, %v571_v29  ;;  %v1038_v44 = vpop.f32.mrb[8].mxu1  ;;  %v932_v45 = vpack.c.bf16 %v725_v33, %v725_v33  ;;  %v1006_v47 = vpop.f32.mrb[8].mxu0  ;;  %v346_v26 = vld [vmem:[#allocation3 + $0x70] sm:$0xff] }
 0x106   :  { %v916_v48 = vpack.c.bf16 %v590_v36, %v590_v36  ;;  %v591_v50 = vadd.f32 %v1168_v10, %v569_v37  ;;  %v519_v51 = vadd.f32 %v1038_v44, %v342_v32  ;;  %793 = vrot.lane.b32.xlu0 %v934_v38, %s1071_s9  ;;  %v478_v52 = vpop.f32.mrb[9].mxu1  ;;  %v1257_v54 = vadd.f32 %v1230_v55, %v707_v34  ;;  %v268_v57 = vpop.f32.mrb[9].mxu0  ;;  %v88_v29 = vld [vmem:[#allocation2 + $0x70] sm:$0xff]  ;;  %v344_v34 = vld [vmem:[#allocation3 + $0x60] sm:$0xff]  ;;  %v89_v44 = vld [vmem:[#allocation2 + $0x78] sm:$0xff] }
 0x107   :  { %v309_v56 = vadd.f32 %v1006_v47, %v84_v35  ;;  %673 = vst.msk [vmem:[%s1477_s5 + $0x8] sm:$0xf] %vm670_vm1, %v918_v41  ;;  %v919_v58 = vpack.c.bf16 %v593_v43, %v593_v43  ;;  %v517_v60 = vadd.f32 %v478_v52, %v340_v39  ;;  %789 = vrot.lane.b32.xlu1 %v932_v45, %s1071_s9  ;;  %v1039_v61 = vpop.f32.mrb[10].mxu1  ;;  %v693_v63 = vld [vmem:[#allocation3 + $0x30] sm:$0xff]  ;;  %v1007_v1 = vpop.f32.mrb[10].mxu0  ;;  %v86_v37 = vld [vmem:[#allocation2 + $0x60] sm:$0xff] }
 0x108   :  { %v935_v62 = vpack.c.bf16 %v728_v40, %v728_v40  ;;  %671 = vst.msk [vmem:[%s1477_s5] sm:$0xf] %vm670_vm1, %v916_v48  ;;  %v307_v0 = vadd.f32 %v268_v57, %v82_v42  ;;  %v552_v2 = vld [vmem:[#allocation2 + $0x30] sm:$0xff]  ;;  %v917_v3 = vpack.c.bf16 %v591_v50, %v591_v50  ;;  %v520_v4 = vadd.f32 %v1039_v61, %v343_v46  ;;  %v481_v5 = vpop.f32.mrb[11].mxu1  ;;  %v691_v7 = vld [vmem:[#allocation3 + $0x20] sm:$0xff]  ;;  %v271_v11 = vpop.f32.mrb[11].mxu0 }
 0x109   :  { %535 = vst.msk [vmem:[#allocation3 + $0x50] sm:$0xff] %vm25_vm0, %v519_v51  ;;  %v712_v6 = vmul.f32 %v1220_v30, %v693_v63  ;;  %326 = vst.msk [vmem:[#allocation2 + $0x50] sm:$0xff] %vm25_vm0, %v309_v56  ;;  %v310_v9 = vadd.f32 %v1007_v1, %v85_v49  ;;  %v574_v12 = vmul.f32 %v1158_v8, %v552_v2  ;;  %v550_v13 = vld [vmem:[#allocation2 + $0x20] sm:$0xff]  ;;  %v694_v16 = vld [vmem:[#allocation3 + $0x38] sm:$0xff] }
 0x10a   :  { %674 = vst.msk [vmem:[%s1477_s5 + $0xc] sm:$0xf] %vm670_vm1, %v919_v58  ;;  %v518_v14 = vadd.f32 %v481_v5, %v341_v53  ;;  %v710_v15 = vmul.f32 %v1220_v30, %v691_v7  ;;  %v308_v17 = vadd.f32 %v271_v11, %v83_v59  ;;  %672 = vst.msk [vmem:[%s1477_s5 + $0x4] sm:$0xf] %vm670_vm1, %v917_v3  ;;  %v553_v19 = vld [vmem:[#allocation2 + $0x38] sm:$0xff]  ;;  %v692_v22 = vld [vmem:[#allocation3 + $0x28] sm:$0xff] }
 0x10b   :  { %533 = vst.msk [vmem:[#allocation3 + $0x40] sm:$0xff] %vm25_vm0, %v517_v60  ;;  %324 = vst.msk [vmem:[#allocation2 + $0x40] sm:$0xff] %vm25_vm0, %v307_v0  ;;  %v572_v18 = vmul.f32 %v1158_v8, %v550_v13  ;;  %v731_v20 = vadd.f32 %v1230_v55, %v712_v6  ;;  %v713_v21 = vmul.f32 %v1220_v30, %v694_v16  ;;  %v551_v25 = vld [vmem:[#allocation2 + $0x28] sm:$0xff]  ;;  %795 = vrot.lane.b32.xlu1 %v935_v62, %s1071_s9  ;;  %v347_v41 = vld [vmem:[#allocation3 + $0x78] sm:$0xff] }
 0x10c   :  { %536 = vst.msk [vmem:[#allocation3 + $0x58] sm:$0xff] %vm25_vm0, %v520_v4  ;;  %327 = vst.msk [vmem:[#allocation2 + $0x58] sm:$0xff] %vm25_vm0, %v310_v9  ;;  %v596_v23 = vadd.f32 %v1168_v10, %v574_v12  ;;  %v575_v24 = vmul.f32 %v1158_v8, %v553_v19  ;;  %v729_v27 = vadd.f32 %v1230_v55, %v710_v15  ;;  %v345_v49 = vld [vmem:[#allocation3 + $0x68] sm:$0xff] }
 0x10d   :  { %534 = vst.msk [vmem:[#allocation3 + $0x48] sm:$0xff] %vm25_vm0, %v518_v14  ;;  %v711_v28 = vmul.f32 %v1220_v30, %v692_v22  ;;  %325 = vst.msk [vmem:[#allocation2 + $0x48] sm:$0xff] %vm25_vm0, %v308_v17  ;;  %v594_v31 = vadd.f32 %v1168_v10, %v572_v18  ;;  %v573_v32 = vmul.f32 %v1158_v8, %v551_v25  ;;  %v1042_v39 = vpop.f32.mrb[12].mxu1  ;;  %v1010_v43 = vpop.f32.mrb[12].mxu0  ;;  %v87_v53 = vld [vmem:[#allocation2 + $0x68] sm:$0xff] }
 0x10e   :  { %v938_v33 = vpack.c.bf16 %v731_v20, %v731_v20  ;;  %v732_v35 = vadd.f32 %v1230_v55, %v713_v21  ;;  %v922_v36 = vpack.c.bf16 %v596_v23, %v596_v23  ;;  %v597_v38 = vadd.f32 %v1168_v10, %v575_v24  ;;  %v494_v48 = vpop.f32.mrb[13].mxu1  ;;  %v284_v52 = vpop.f32.mrb[13].mxu0 }
 0x10f   :  { %v933_v40 = vpack.c.bf16 %v1257_v54, %v1257_v54  ;;  %v936_v42 = vpack.c.bf16 %v729_v27, %v729_v27  ;;  %v920_v45 = vpack.c.bf16 %v594_v31, %v594_v31  ;;  %v595_v46 = vadd.f32 %v1168_v10, %v573_v32  ;;  %v1043_v57 = vpop.f32.mrb[14].mxu1  ;;  %v1011_v61 = vpop.f32.mrb[14].mxu0 }
 0x110   :  { %v523_v47 = vadd.f32 %v1042_v39, %v346_v26  ;;  %801 = vrot.lane.b32.xlu0 %v938_v33, %s1071_s9  ;;  %v1304_v50 = vadd.f32 %v1230_v55, %v711_v28  ;;  %v313_v51 = vadd.f32 %v1010_v43, %v88_v29  ;;  %677 = vst.msk [vmem:[%s1477_s5 + $0x18] sm:$0xf] %vm670_vm1, %v922_v36  ;;  %v697_v59 = vld [vmem:[#allocation3 + $0x50] sm:$0xff]  ;;  %v497_v1 = vpop.f32.mrb[15].mxu1  ;;  %v287_v5 = vpop.f32.mrb[15].mxu0 }
 0x111   :  { %v923_v54 = vpack.c.bf16 %v597_v38, %v597_v38  ;;  %v521_v56 = vadd.f32 %v494_v48, %v344_v34  ;;  %791 = vrot.lane.b32.xlu1 %v933_v40, %s1071_s9  ;;  %v939_v58 = vpack.c.bf16 %v732_v35, %v732_v35  ;;  %v311_v60 = vadd.f32 %v284_v52, %v86_v37  ;;  %v556_v62 = vld [vmem:[#allocation2 + $0x50] sm:$0xff] }
 0x112   :  { %675 = vst.msk [vmem:[%s1477_s5 + $0x10] sm:$0xf] %vm670_vm1, %v920_v45  ;;  %v921_v63 = vpack.c.bf16 %v595_v46, %v595_v46  ;;  %v524_v0 = vadd.f32 %v1043_v57, %v347_v41  ;;  %v716_v2 = vmul.f32 %v1220_v30, %v697_v59  ;;  %v695_v3 = vld [vmem:[#allocation3 + $0x40] sm:$0xff]  ;;  %v314_v4 = vadd.f32 %v1011_v61, %v89_v44 }
 0x113   :  { %539 = vst.msk [vmem:[#allocation3 + $0x70] sm:$0xff] %vm25_vm0, %v523_v47  ;;  %330 = vst.msk [vmem:[#allocation2 + $0x70] sm:$0xff] %vm25_vm0, %v313_v51  ;;  %v578_v6 = vmul.f32 %v1158_v8, %v556_v62  ;;  %v554_v7 = vld [vmem:[#allocation2 + $0x40] sm:$0xff]  ;;  %v522_v9 = vadd.f32 %v497_v1, %v345_v49  ;;  %v714_v11 = vmul.f32 %v1220_v30, %v695_v3  ;;  %v698_v12 = vld [vmem:[#allocation3 + $0x58] sm:$0xff] }
 0x114   :  { %678 = vst.msk [vmem:[%s1477_s5 + $0x1c] sm:$0xf] %vm670_vm1, %v923_v54  ;;  %v312_v13 = vadd.f32 %v287_v5, %v87_v53  ;;  %676 = vst.msk [vmem:[%s1477_s5 + $0x14] sm:$0xf] %vm670_vm1, %v921_v63  ;;  %v576_v14 = vmul.f32 %v1158_v8, %v554_v7  ;;  %v557_v15 = vld [vmem:[#allocation2 + $0x58] sm:$0xff]  ;;  %797 = vrot.lane.b32.xlu0 %v936_v42, %s1071_s9  ;;  %v735_v16 = vadd.f32 %v1230_v55, %v716_v2  ;;  %v696_v18 = vld [vmem:[#allocation3 + $0x48] sm:$0xff] }
 0x115   :  { %537 = vst.msk [vmem:[#allocation3 + $0x60] sm:$0xff] %vm25_vm0, %v521_v56  ;;  %328 = vst.msk [vmem:[#allocation2 + $0x60] sm:$0xff] %vm25_vm0, %v311_v60  ;;  %v717_v17 = vmul.f32 %v1220_v30, %v698_v12  ;;  %v600_v19 = vadd.f32 %v1168_v10, %v578_v6  ;;  %v579_v20 = vmul.f32 %v1158_v8, %v557_v15  ;;  %v555_v21 = vld [vmem:[#allocation2 + $0x48] sm:$0xff]  ;;  %803 = vrot.lane.b32.xlu1 %v939_v58, %s1071_s9 }
 0x116   :  { %540 = vst.msk [vmem:[#allocation3 + $0x78] sm:$0xff] %vm25_vm0, %v524_v0  ;;  %331 = vst.msk [vmem:[#allocation2 + $0x78] sm:$0xff] %vm25_vm0, %v314_v4  ;;  %v715_v22 = vmul.f32 %v1220_v30, %v696_v18  ;;  %v598_v23 = vadd.f32 %v1168_v10, %v576_v14  ;;  %v577_v24 = vmul.f32 %v1158_v8, %v555_v21 }
 0x117   :  { %538 = vst.msk [vmem:[#allocation3 + $0x68] sm:$0xff] %vm25_vm0, %v522_v9  ;;  %329 = vst.msk [vmem:[#allocation2 + $0x68] sm:$0xff] %vm25_vm0, %v312_v13  ;;  %v942_v25 = vpack.c.bf16 %v735_v16, %v735_v16  ;;  %v733_v26 = vadd.f32 %v1230_v55, %v714_v11  ;;  %v926_v27 = vpack.c.bf16 %v600_v19, %v600_v19 }
 0x118   :  { %v601_v28 = vadd.f32 %v1168_v10, %v579_v20  ;;  %v937_v29 = vpack.c.bf16 %v1304_v50, %v1304_v50  ;;  %v736_v31 = vadd.f32 %v1230_v55, %v717_v17  ;;  %v924_v32 = vpack.c.bf16 %v598_v23, %v598_v23 }
 0x119   :  { %v599_v33 = vadd.f32 %v1168_v10, %v577_v24  ;;  %809 = vrot.lane.b32.xlu0 %v942_v25, %s1071_s9  ;;  %v734_v34 = vadd.f32 %v1230_v55, %v715_v22  ;;  %681 = vst.msk [vmem:[%s1477_s5 + $0x28] sm:$0xf] %vm670_vm1, %v926_v27  ;;  %v940_v39 = vpack.c.bf16 %v733_v26, %v733_v26 }
 0x11a   :  { %v927_v35 = vpack.c.bf16 %v601_v28, %v601_v28  ;;  %799 = vrot.lane.b32.xlu1 %v937_v29, %s1071_s9  ;;  %v701_v36 = vld [vmem:[#allocation3 + $0x70] sm:$0xff]  ;;  %679 = vst.msk [vmem:[%s1477_s5 + $0x20] sm:$0xf] %vm670_vm1, %v924_v32  ;;  %v943_v44 = vpack.c.bf16 %v736_v31, %v736_v31 }
 0x11b   :  { %v925_v37 = vpack.c.bf16 %v599_v33, %v599_v33  ;;  %v560_v38 = vld [vmem:[#allocation2 + $0x70] sm:$0xff]  ;;  %v720_v41 = vmul.f32 %v1220_v30, %v701_v36  ;;  %v941_v49 = vpack.c.bf16 %v734_v34, %v734_v34 }
 0x11c   :  { %v699_v40 = vld [vmem:[#allocation3 + $0x60] sm:$0xff]  ;;  %682 = vst.msk [vmem:[%s1477_s5 + $0x2c] sm:$0xf] %vm670_vm1, %v927_v35  ;;  %v582_v43 = vmul.f32 %v1158_v8, %v560_v38 }
 0x11d   :  { %v558_v42 = vld [vmem:[#allocation2 + $0x60] sm:$0xff]  ;;  %v718_v45 = vmul.f32 %v1220_v30, %v699_v40  ;;  %v702_v46 = vld [vmem:[#allocation3 + $0x78] sm:$0xff]  ;;  %680 = vst.msk [vmem:[%s1477_s5 + $0x24] sm:$0xf] %vm670_vm1, %v925_v37  ;;  %805 = vrot.lane.b32.xlu0 %v940_v39, %s1071_s9  ;;  %v739_v59 = vadd.f32 %v1230_v55, %v720_v41 }
 0x11e   :  { %v580_v47 = vmul.f32 %v1158_v8, %v558_v42  ;;  %v561_v48 = vld [vmem:[#allocation2 + $0x78] sm:$0xff]  ;;  %v700_v50 = vld [vmem:[#allocation3 + $0x68] sm:$0xff]  ;;  %v604_v51 = vadd.f32 %v1168_v10, %v582_v43  ;;  %811 = vrot.lane.b32.xlu1 %v943_v44, %s1071_s9  ;;  %v721_v60 = vmul.f32 %v1220_v30, %v702_v46 }
 0x11f   :  { %v559_v52 = vld [vmem:[#allocation2 + $0x68] sm:$0xff]  ;;  %v583_v53 = vmul.f32 %v1158_v8, %v561_v48  ;;  %v737_v54 = vadd.f32 %v1230_v55, %v718_v45  ;;  %v719_v56 = vmul.f32 %v1220_v30, %v700_v50 }
 0x120   :  { %v602_v57 = vadd.f32 %v1168_v10, %v580_v47  ;;  %v581_v58 = vmul.f32 %v1158_v8, %v559_v52  ;;  %v930_v61 = vpack.c.bf16 %v604_v51, %v604_v51  ;;  %v740_v4 = vadd.f32 %v1230_v55, %v721_v60 }
 0x121   :  { %v605_v62 = vadd.f32 %v1168_v10, %v583_v53  ;;  %v944_v63 = vpack.c.bf16 %v737_v54, %v737_v54  ;;  %v738_v0 = vadd.f32 %v1230_v55, %v719_v56 }
 0x122   :  { %v928_v1 = vpack.c.bf16 %v602_v57, %v602_v57  ;;  %v603_v2 = vadd.f32 %v1168_v10, %v581_v58  ;;  %685 = vst.msk [vmem:[%s1477_s5 + $0x38] sm:$0xf] %vm670_vm1, %v930_v61  ;;  %807 = vrot.lane.b32.xlu1 %v941_v49, %s1071_s9  ;;  %v946_v10 = vpack.c.bf16 %v739_v59, %v739_v59 }
 0x123   :  { %v931_v3 = vpack.c.bf16 %v605_v62, %v605_v62  ;;  %813 = vrot.lane.b32.xlu0 %v944_v63, %s1071_s9  ;;  %v945_v30 = vpack.c.bf16 %v738_v0, %v738_v0  ;;  %v947_v5 = vpack.c.bf16 %v740_v4, %v740_v4 }
 0x124   :  { %683 = vst.msk [vmem:[%s1477_s5 + $0x30] sm:$0xf] %vm670_vm1, %v928_v1  ;;  %v929_v8 = vpack.c.bf16 %v603_v2, %v603_v2 }
 0x125   :  { %686 = vst.msk [vmem:[%s1477_s5 + $0x3c] sm:$0xf] %vm670_vm1, %v931_v3 }
 0x126   :  { %684 = vst.msk [vmem:[%s1477_s5 + $0x34] sm:$0xf] %vm670_vm1, %v929_v8  ;;  %815 = vrot.lane.b32.xlu1 %v945_v30, %s1071_s9 }
 0x127   :  { %817 = vrot.lane.b32.xlu0 %v946_v10, %s1071_s9 }
 0x12a   :  { %819 = vrot.lane.b32.xlu1 %v947_v5, %s1071_s9 }
 0x178   :  { %v794_v6 = vpop.permute.xlu0 %793 }
 0x179   :  { %840 = vst.msk [vmem:[%s1477_s5 + $0x8] sm:$0xf] %vm837_vm2, %v794_v6  ;;  %v790_v55 = vpop.permute.xlu1 %789 }
 0x17a   :  { %838 = vst.msk [vmem:[%s1477_s5] sm:$0xf] %vm837_vm2, %v790_v55 }
 0x17d   :  { %v796_v7 = vpop.permute.xlu1 %795 }
 0x17e   :  { %841 = vst.msk [vmem:[%s1477_s5 + $0xc] sm:$0xf] %vm837_vm2, %v796_v7 }
 0x182   :  { %v802_v9 = vpop.permute.xlu0 %801 }
 0x183   :  { %844 = vst.msk [vmem:[%s1477_s5 + $0x18] sm:$0xf] %vm837_vm2, %v802_v9  ;;  %v792_v11 = vpop.permute.xlu1 %791 }
 0x184   :  { %839 = vst.msk [vmem:[%s1477_s5 + $0x4] sm:$0xf] %vm837_vm2, %v792_v11 }
 0x186   :  { %v798_v12 = vpop.permute.xlu0 %797 }
 0x187   :  { %842 = vst.msk [vmem:[%s1477_s5 + $0x10] sm:$0xf] %vm837_vm2, %v798_v12  ;;  %v804_v13 = vpop.permute.xlu1 %803 }
 0x188   :  { %845 = vst.msk [vmem:[%s1477_s5 + $0x1c] sm:$0xf] %vm837_vm2, %v804_v13 }
 0x18b   :  { %v810_v14 = vpop.permute.xlu0 %809 }
 0x18c   :  { %848 = vst.msk [vmem:[%s1477_s5 + $0x28] sm:$0xf] %vm837_vm2, %v810_v14  ;;  %v800_v15 = vpop.permute.xlu1 %799 }
 0x18d   :  { %843 = vst.msk [vmem:[%s1477_s5 + $0x14] sm:$0xf] %vm837_vm2, %v800_v15 }
 0x18f   :  { %v806_v16 = vpop.permute.xlu0 %805 }
 0x190   :  { %846 = vst.msk [vmem:[%s1477_s5 + $0x20] sm:$0xf] %vm837_vm2, %v806_v16  ;;  %v812_v17 = vpop.permute.xlu1 %811 }
 0x191   :  { %849 = vst.msk [vmem:[%s1477_s5 + $0x2c] sm:$0xf] %vm837_vm2, %v812_v17 }
 0x194   :  { %v808_v18 = vpop.permute.xlu1 %807 }
 0x195   :  { %v814_v19 = vpop.permute.xlu0 %813  ;;  %847 = vst.msk [vmem:[%s1477_s5 + $0x24] sm:$0xf] %vm837_vm2, %v808_v18 }
 0x196   :  { %850 = vst.msk [vmem:[%s1477_s5 + $0x30] sm:$0xf] %vm837_vm2, %v814_v19 }
 0x198   :  { %v816_v21 = vpop.permute.xlu1 %815 }
 0x199   :  { %v818_v20 = vpop.permute.xlu0 %817  ;;  %851 = vst.msk [vmem:[%s1477_s5 + $0x34] sm:$0xf] %vm837_vm2, %v816_v21 }
 0x19a   :  { %852 = vst.msk [vmem:[%s1477_s5 + $0x38] sm:$0xf] %vm837_vm2, %v818_v20 }
 0x19c   :  { %v820_v22 = vpop.permute.xlu1 %819 }
 0x19d   :  { %853 = vst.msk [vmem:[%s1477_s5 + $0x3c] sm:$0xf] %vm837_vm2, %v820_v22 }

// kernel: h2gcn_forward.5
= control target key start
LH: loop header
LB: loop body
LE: loop exit
PB: predicated region body
PF: predicated region fallthrough
CT: control target
= control target key end

     0   :  { %vm918_vm0 = vcmask 523264   ;;  %s2254_s2 = inlined_call_operand.vmem [shape: bf16[128,128], index: 2, kind: input, shape index: {}, may-alias: {2,4}]   ;;  %s2255_s0 = inlined_call_operand.vmem [shape: bf16[128,128], index: 0, kind: input, shape index: {}]   ;;  %s2256_s1 = inlined_call_operand.vmem [shape: bf16[128,128], index: 1, kind: input, shape index: {}]   ;;  %s2257_s5 = inlined_call_operand.vmem [shape: bf16[64,128], index: 5, kind: input, shape index: {}]   ;;  %s2258_s3 = inlined_call_operand.vmem [shape: bf16[128,64], index: 3, kind: input, shape index: {}]   ;;  %s2259_s7 = inlined_call_operand.vmem [shape: bf16[128,128], index: 7, kind: input, shape index: {}]   ;;  %s2260_s6 = inlined_call_operand.vmem [shape: bf16[128,128], index: 6, kind: input, shape index: {}]   ;;  %s2261_s8 = inlined_call_operand.vmem [shape: bf16[128,128], index: 8, kind: input, shape index: {}]   ;;  %s2262_s4 = inlined_call_operand.vmem [shape: bf16[128,128], index: 4, kind: input, shape index: {}, may-alias: {2,4}]   ;;  %s2263_s9 = inlined_call_operand.vmem [shape: f32[1,128], index: 9, kind: input, shape index: {}]   ;;  %s2264_s10 = inlined_call_operand.vmem [shape: f32[128,128], index: 10, kind: output, shape index: {}]  }
   0x1   :  { %v1838_v0 = vld [vmem:[%s2254_s2] sm:$0xff]   ;;  %v1839_v1 = vld [vmem:[%s2254_s2 + $0x8] sm:$0xff]   ;;  %v1840_v2 = vld [vmem:[%s2254_s2 + $0x10] sm:$0xff]  }
   0x2   :  { %1606 = vmatprep.subr.bf16.mxu1 %v1838_v0  ;;  %v1973_v3 = vld [vmem:[%s2254_s2 + $0x18] sm:$0xff]   ;;  %v1846_v4 = vld [vmem:[%s2255_s0] sm:$0xff]   ;;  %v1989_v6 = vld [vmem:[%s2254_s2 + $0x28] sm:$0xff]  }
   0x3   :  { %1607 = vmatpush3.bf16.msra.mxu1 %v1838_v0  ;;  %1622 = vmatprep.mubr.bf16.mxu1 %v1846_v4  ;;  %v1982_v5 = vld [vmem:[%s2254_s2 + $0x20] sm:$0xff]   ;;  %v1996_v7 = vld [vmem:[%s2254_s2 + $0x30] sm:$0xff]   ;;  %v2002_v8 = vld [vmem:[%s2254_s2 + $0x38] sm:$0xff]  }
   0x4   :  { %1608 = vmatprep.subr.bf16.mxu1 %v1839_v1  ;;  %v1862_v9 = vld [vmem:[%s2257_s5] sm:$0xff]   ;;  %v1863_v10 = vld [vmem:[%s2257_s5 + $0x8] sm:$0xff]   ;;  %v1864_v11 = vld [vmem:[%s2257_s5 + $0x10] sm:$0xff]  }
   0x5   :  { %1702 = vmatprep.subr.bf16.mxu0 %v1862_v9  ;;  %v1866_v12 = vld [vmem:[%s2258_s3] sm:$0xff]   ;;  %v1847_v13 = vld [vmem:[%s2255_s0 + $0x8] sm:$0xff]   ;;  %v1848_v14 = vld [vmem:[%s2255_s0 + $0x10] sm:$0xff]  }
   0x6   :  { %1703 = vmatpush3.bf16.msra.mxu0 %v1862_v9  ;;  %1710 = vmatprep.mubr.msk.bf16.mxu0 %vm918_vm0, %v1866_v12  ;;  %v1865_v15 = vld [vmem:[%s2257_s5 + $0x18] sm:$0xff]   ;;  %v1868_v16 = vld [vmem:[%s2259_s7] sm:$0xff]   ;;  %v1867_v19 = vld [vmem:[%s2258_s3 + $0x8] sm:$0xff]  }
   0x7   :  { %1609 = vmatpush3.bf16.msra.mxu1 %v1839_v1  ;;  %1704 = vmatprep.subr.bf16.mxu0 %v1863_v10  ;;  %v1849_v17 = vld [vmem:[%s2255_s0 + $0x18] sm:$0xff]   ;;  %v1850_v18 = vld [vmem:[%s2255_s0 + $0x20] sm:$0xff]   ;;  %v1870_v20 = vld [vmem:[%s2258_s3 + $0x10] sm:$0xff]  }
   0x8   :  { %1610 = vmatprep.subr.bf16.mxu1 %v1840_v2  ;;  %v1869_v21 = vld [vmem:[%s2259_s7 + $0x8] sm:$0xff]   ;;  %v1872_v23 = vld [vmem:[%s2259_s7 + $0x10] sm:$0xff]   ;;  %v1871_v25 = vld [vmem:[%s2258_s3 + $0x18] sm:$0xff]  }
   0x9   :  { %v1851_v22 = vld [vmem:[%s2255_s0 + $0x28] sm:$0xff]   ;;  %v1852_v24 = vld [vmem:[%s2255_s0 + $0x30] sm:$0xff]   ;;  %v1874_v26 = vld [vmem:[%s2258_s3 + $0x20] sm:$0xff]  }
   0xa   :  { %1705 = vmatpush3.bf16.msra.mxu0 %v1863_v10  ;;  %v1873_v27 = vld [vmem:[%s2259_s7 + $0x18] sm:$0xff]   ;;  %v1876_v29 = vld [vmem:[%s2259_s7 + $0x20] sm:$0xff]   ;;  %v1875_v31 = vld [vmem:[%s2258_s3 + $0x28] sm:$0xff]  }
   0xb   :  { %1611 = vmatpush3.bf16.msra.mxu1 %v1840_v2  ;;  %1706 = vmatprep.subr.bf16.mxu0 %v1864_v11  ;;  %v1853_v28 = vld [vmem:[%s2255_s0 + $0x38] sm:$0xff]   ;;  %v1854_v30 = vld [vmem:[%s2256_s1] sm:$0xff]   ;;  %v1878_v32 = vld [vmem:[%s2258_s3 + $0x30] sm:$0xff]  }
   0xc   :  { %1612 = vmatprep.subr.bf16.mxu1 %v1973_v3  ;;  %v1877_v33 = vld [vmem:[%s2259_s7 + $0x28] sm:$0xff]   ;;  %v1880_v35 = vld [vmem:[%s2259_s7 + $0x30] sm:$0xff]   ;;  %v1879_v37 = vld [vmem:[%s2258_s3 + $0x38] sm:$0xff]  }
   0xd   :  { %v1855_v34 = vld [vmem:[%s2256_s1 + $0x8] sm:$0xff]   ;;  %v1856_v36 = vld [vmem:[%s2256_s1 + $0x10] sm:$0xff]   ;;  %v1857_v38 = vld [vmem:[%s2256_s1 + $0x18] sm:$0xff]  }
   0xe   :  { %1707 = vmatpush3.bf16.msra.mxu0 %v1864_v11  ;;  %v1858_v39 = vld [vmem:[%s2256_s1 + $0x20] sm:$0xff]   ;;  %v1859_v40 = vld [vmem:[%s2256_s1 + $0x28] sm:$0xff]   ;;  %v1860_v41 = vld [vmem:[%s2256_s1 + $0x30] sm:$0xff]  }
   0xf   :  { %1613 = vmatpush3.bf16.msra.mxu1 %v1973_v3  ;;  %1708 = vmatprep.subr.bf16.mxu0 %v1865_v15  ;;  %v1861_v42 = vld [vmem:[%s2256_s1 + $0x38] sm:$0xff]   ;;  %v1882_v44 = vld [vmem:[%s2260_s6] sm:$0xff]   ;;  %v1884_v46 = vld [vmem:[%s2260_s6 + $0x8] sm:$0xff]  }
  0x10   :  { %1614 = vmatprep.subr.bf16.mxu1 %v1982_v5  ;;  %v1881_v43 = vld [vmem:[%s2259_s7 + $0x38] sm:$0xff]   ;;  %v1883_v45 = vld [vmem:[%s2261_s8] sm:$0xff]   ;;  %v1886_v47 = vld [vmem:[%s2260_s6 + $0x10] sm:$0xff]  }
  0x11   :  { %v1888_v48 = vld [vmem:[%s2260_s6 + $0x18] sm:$0xff]   ;;  %v1890_v49 = vld [vmem:[%s2260_s6 + $0x20] sm:$0xff]   ;;  %v1892_v50 = vld [vmem:[%s2260_s6 + $0x28] sm:$0xff]  }
  0x12   :  { %1709 = vmatpush3.bf16.msra.mxu0 %v1865_v15  ;;  %v1894_v51 = vld [vmem:[%s2260_s6 + $0x30] sm:$0xff]   ;;  %v1896_v52 = vld [vmem:[%s2260_s6 + $0x38] sm:$0xff]   ;;  %v1898_v53 = vld [vmem:[%s2262_s4] sm:$0xff]  }
  0x13   :  { %1615 = vmatpush3.bf16.msra.mxu1 %v1982_v5  ;;  %1726 = vmatprep.subr.bf16.mxu0 %v1868_v16  ;;  %v1899_v54 = vld [vmem:[%s2262_s4 + $0x8] sm:$0xff]   ;;  %v1900_v55 = vld [vmem:[%s2262_s4 + $0x10] sm:$0xff]   ;;  %v1901_v56 = vld [vmem:[%s2262_s4 + $0x18] sm:$0xff]  }
  0x14   :  { %1616 = vmatprep.subr.bf16.mxu1 %v1989_v6  ;;  %v1902_v57 = vld [vmem:[%s2262_s4 + $0x20] sm:$0xff]   ;;  %v1903_v58 = vld [vmem:[%s2262_s4 + $0x28] sm:$0xff]   ;;  %v1904_v59 = vld [vmem:[%s2262_s4 + $0x30] sm:$0xff]  }
  0x15   :  { %1711 = vmatmul.mubr.msk.bf16.vlgmr.msra.gmra.mrb[0].mxu0 %vm918_vm0, %v1867_v19  ;;  %v1905_v60 = vld [vmem:[%s2262_s4 + $0x38] sm:$0xff]   ;;  %v1893_v19 = vld [vmem:[%s2261_s8 + $0x28] sm:$0xff]  }
  0x16   :  { %1727 = vmatpush3.bf16.msra.mxu0 %v1868_v16  ;;  %1714 = vmatprep.mubr.msk.bf16.mxu0 %vm918_vm0, %v1870_v20  ;;  %v1889_v11 = vld [vmem:[%s2261_s8 + $0x18] sm:$0xff]  }
  0x17   :  { %1617 = vmatpush3.bf16.msra.mxu1 %v1989_v6  ;;  %1728 = vmatprep.subr.bf16.mxu0 %v1869_v21 }
  0x18   :  { %1618 = vmatprep.subr.bf16.mxu1 %v1996_v7 }
  0x1a   :  { %1729 = vmatpush3.bf16.msra.mxu0 %v1869_v21 }
  0x1b   :  { %1619 = vmatpush3.bf16.msra.mxu1 %v1996_v7  ;;  %1730 = vmatprep.subr.bf16.mxu0 %v1872_v23 }
  0x1c   :  { %1620 = vmatprep.subr.bf16.mxu1 %v2002_v8 }
  0x1d   :  { %1715 = vmatmul.mubr.msk.bf16.gmra.mrb[4].mxu0 %vm918_vm0, %v1871_v25 }
  0x1e   :  { %1731 = vmatpush3.bf16.msra.mxu0 %v1872_v23  ;;  %1718 = vmatprep.mubr.msk.bf16.mxu0 %vm918_vm0, %v1874_v26 }
  0x1f   :  { %1621 = vmatpush3.bf16.msra.mxu1 %v2002_v8  ;;  %1732 = vmatprep.subr.bf16.mxu0 %v1873_v27 }
  0x20   :  { %1638 = vmatprep.subr.bf16.mxu1 %v1838_v0 }
  0x22   :  { %1623 = vmatmul.mubr.bf16.vlgmr.msra.gmra.mrb[0].mxu1 %v1847_v13  ;;  %1733 = vmatpush3.bf16.msra.mxu0 %v1873_v27  ;;  %v1897_v27 = vld [vmem:[%s2261_s8 + $0x38] sm:$0xff]  }
  0x23   :  { %1639 = vmatpush3.bf16.msra.mxu1 %v1838_v0  ;;  %1626 = vmatprep.mubr.bf16.mxu1 %v1848_v14  ;;  %v1891_v14 = vld [vmem:[%s2261_s8 + $0x20] sm:$0xff]  }
  0x24   :  { %1640 = vmatprep.subr.bf16.mxu1 %v1839_v1  ;;  %1734 = vmatprep.subr.bf16.mxu0 %v1876_v29 }
  0x25   :  { %1719 = vmatmul.mubr.msk.bf16.gmra.mrb[8].mxu0 %vm918_vm0, %v1875_v31 }
  0x26   :  { %1735 = vmatpush3.bf16.msra.mxu0 %v1876_v29  ;;  %1722 = vmatprep.mubr.msk.bf16.mxu0 %vm918_vm0, %v1878_v32 }
  0x27   :  { %1641 = vmatpush3.bf16.msra.mxu1 %v1839_v1  ;;  %1736 = vmatprep.subr.bf16.mxu0 %v1877_v33 }
  0x28   :  { %1642 = vmatprep.subr.bf16.mxu1 %v1840_v2 }
  0x2a   :  { %1627 = vmatmul.mubr.bf16.gmra.mrb[4].mxu1 %v1849_v17  ;;  %1737 = vmatpush3.bf16.msra.mxu0 %v1877_v33 }
  0x2b   :  { %1643 = vmatpush3.bf16.msra.mxu1 %v1840_v2  ;;  %1630 = vmatprep.mubr.bf16.mxu1 %v1850_v18 }
  0x2c   :  { %1644 = vmatprep.subr.bf16.mxu1 %v1973_v3  ;;  %1738 = vmatprep.subr.bf16.mxu0 %v1880_v35 }
  0x2d   :  { %1723 = vmatmul.mubr.msk.bf16.gmra.mrb[12].mxu0 %vm918_vm0, %v1879_v37 }
  0x2e   :  { %1739 = vmatpush3.bf16.msra.mxu0 %v1880_v35 }
  0x2f   :  { %1645 = vmatpush3.bf16.msra.mxu1 %v1973_v3  ;;  %1740 = vmatprep.subr.bf16.mxu0 %v1881_v43  ;;  %v1885_v3 = vld [vmem:[%s2261_s8 + $0x8] sm:$0xff]  }
  0x30   :  { %1646 = vmatprep.subr.bf16.mxu1 %v1982_v5 }
  0x32   :  { %1631 = vmatmul.mubr.bf16.gmra.mrb[8].mxu1 %v1851_v22  ;;  %1741 = vmatpush3.bf16.msra.mxu0 %v1881_v43  ;;  %v1895_v22 = vld [vmem:[%s2261_s8 + $0x30] sm:$0xff]  }
  0x33   :  { %1647 = vmatpush3.bf16.msra.mxu1 %v1982_v5  ;;  %1634 = vmatprep.mubr.bf16.mxu1 %v1852_v24 }
  0x34   :  { %1648 = vmatprep.subr.bf16.mxu1 %v1989_v6  ;;  %1758 = vmatprep.subr.bf16.mxu0 %v1883_v45 }
  0x37   :  { %1649 = vmatpush3.bf16.msra.mxu1 %v1989_v6  ;;  %v1887_v6 = vld [vmem:[%s2261_s8 + $0x10] sm:$0xff]  }
  0x38   :  { %1650 = vmatprep.subr.bf16.mxu1 %v1996_v7 }
  0x3a   :  { %1635 = vmatmul.mubr.bf16.gmra.mrb[12].mxu1 %v1853_v28 }
  0x3b   :  { %1651 = vmatpush3.bf16.msra.mxu1 %v1996_v7  ;;  %1654 = vmatprep.mubr.bf16.mxu1 %v1854_v30 }
  0x3c   :  { %1652 = vmatprep.subr.bf16.mxu1 %v2002_v8 }
  0x3f   :  { %1653 = vmatpush3.bf16.msra.mxu1 %v2002_v8 }
  0x40   :  { %1670 = vmatprep.subr.bf16.mxu1 %v1882_v44 }
  0x42   :  { %1655 = vmatmul.mubr.bf16.vlgmr.msra.gmra.mrb[16].mxu1 %v1855_v34 }
  0x43   :  { %1658 = vmatprep.mubr.bf16.mxu1 %v1856_v36  ;;  %1671 = vmatpush3.bf16.msra.mxu1 %v1882_v44 }
  0x44   :  { %1672 = vmatprep.subr.bf16.mxu1 %v1884_v46 }
  0x47   :  { %1673 = vmatpush3.bf16.msra.mxu1 %v1884_v46 }
  0x48   :  { %1674 = vmatprep.subr.bf16.mxu1 %v1886_v47 }
  0x4a   :  { %1659 = vmatmul.mubr.bf16.gmra.mrb[20].mxu1 %v1857_v38 }
  0x4b   :  { %1662 = vmatprep.mubr.bf16.mxu1 %v1858_v39  ;;  %1675 = vmatpush3.bf16.msra.mxu1 %v1886_v47 }
  0x4c   :  { %1676 = vmatprep.subr.bf16.mxu1 %v1888_v48 }
  0x4f   :  { %1677 = vmatpush3.bf16.msra.mxu1 %v1888_v48 }
  0x50   :  { %1678 = vmatprep.subr.bf16.mxu1 %v1890_v49 }
  0x52   :  { %1663 = vmatmul.mubr.bf16.gmra.mrb[24].mxu1 %v1859_v40 }
  0x53   :  { %1666 = vmatprep.mubr.bf16.mxu1 %v1860_v41  ;;  %1679 = vmatpush3.bf16.msra.mxu1 %v1890_v49 }
  0x54   :  { %1680 = vmatprep.subr.bf16.mxu1 %v1892_v50 }
  0x57   :  { %1681 = vmatpush3.bf16.msra.mxu1 %v1892_v50 }
  0x58   :  { %1682 = vmatprep.subr.bf16.mxu1 %v1894_v51 }
  0x5a   :  { %1667 = vmatmul.mubr.bf16.gmra.mrb[28].mxu1 %v1861_v42 }
  0x5b   :  { %1683 = vmatpush3.bf16.msra.mxu1 %v1894_v51  ;;  %1686 = vmatprep.mubr.bf16.mxu1 %v1898_v53 }
  0x5c   :  { %1684 = vmatprep.subr.bf16.mxu1 %v1896_v52 }
  0x5f   :  { %1685 = vmatpush3.bf16.msra.mxu1 %v1896_v52 }
  0x62   :  { %1687 = vmatmul.mubr.bf16.vlgmr.msra.gmra.mrb[32].mxu1 %v1899_v54 }
  0x63   :  { %1690 = vmatprep.mubr.bf16.mxu1 %v1900_v55 }
  0x6a   :  { %1691 = vmatmul.mubr.bf16.gmra.mrb[36].mxu1 %v1901_v56 }
  0x6b   :  { %1694 = vmatprep.mubr.bf16.mxu1 %v1902_v57 }
  0x72   :  { %1695 = vmatmul.mubr.bf16.gmra.mrb[40].mxu1 %v1903_v58 }
  0x73   :  { %1698 = vmatprep.mubr.bf16.mxu1 %v1904_v59 }
  0x7a   :  { %1699 = vmatmul.mubr.bf16.gmra.mrb[44].mxu1 %v1905_v60 }
  0xf5   :  { %v1624_v61 = vpop.f32.mrb[0].mxu1 }
  0xf6   :  { %v250_v62 = vpop.f32.mrb[1].mxu1 }
  0xf7   :  { %v1625_v63 = vpop.f32.mrb[2].mxu1 }
  0xf8   :  { %v574_v0 = vpack.c.bf16 %v1625_v63, %v1624_v61  ;;  %v253_v1 = vpop.f32.mrb[3].mxu1 }
  0xf9   :  { %v573_v2 = vpack.c.bf16 %v253_v1, %v250_v62 }
  0xfb   :  { %1742 = vmatprep.mubr.bf16.mxu0 %v573_v2 }
  0xfc   :  { %1743 = vmatmul.mubr.bf16.vlgmr.msra.gmra.mrb[0].mxu0 %v574_v0 }
  0xfd   :  { %v1628_v4 = vpop.f32.mrb[4].mxu1  ;;  %1759 = vmatpush3.bf16.msra.mxu0 %v1883_v45 }
  0xfe   :  { %v266_v5 = vpop.f32.mrb[5].mxu1  ;;  %1760 = vmatprep.subr.bf16.mxu0 %v1885_v3 }
  0xff   :  { %v1629_v7 = vpop.f32.mrb[6].mxu1 }
 0x100   :  { %v576_v8 = vpack.c.bf16 %v1629_v7, %v1628_v4  ;;  %v269_v9 = vpop.f32.mrb[7].mxu1 }
 0x101   :  { %v575_v10 = vpack.c.bf16 %v269_v9, %v266_v5  ;;  %1761 = vmatpush3.bf16.msra.mxu0 %v1885_v3  ;;  %v1513_v5 = vld [vmem:[%s2263_s9] ss:$0 sm:$0xff] }
 0x102   :  { %1762 = vmatprep.subr.bf16.mxu0 %v1887_v6 }
 0x103   :  { %1746 = vmatprep.mubr.bf16.mxu0 %v575_v10 }
 0x104   :  { %1747 = vmatmul.mubr.bf16.gmra.mrb[4].mxu0 %v576_v8 }
 0x105   :  { %v1632_v12 = vpop.f32.mrb[8].mxu1  ;;  %1763 = vmatpush3.bf16.msra.mxu0 %v1887_v6 }
 0x106   :  { %v282_v13 = vpop.f32.mrb[9].mxu1  ;;  %1764 = vmatprep.subr.bf16.mxu0 %v1889_v11 }
 0x107   :  { %v1633_v15 = vpop.f32.mrb[10].mxu1 }
 0x108   :  { %v578_v16 = vpack.c.bf16 %v1633_v15, %v1632_v12  ;;  %v285_v17 = vpop.f32.mrb[11].mxu1 }
 0x109   :  { %v577_v18 = vpack.c.bf16 %v285_v17, %v282_v13  ;;  %1765 = vmatpush3.bf16.msra.mxu0 %v1889_v11 }
 0x10a   :  { %1766 = vmatprep.subr.bf16.mxu0 %v1891_v14 }
 0x10b   :  { %1750 = vmatprep.mubr.bf16.mxu0 %v577_v18 }
 0x10c   :  { %1751 = vmatmul.mubr.bf16.gmra.mrb[8].mxu0 %v578_v16 }
 0x10d   :  { %v1636_v20 = vpop.f32.mrb[12].mxu1  ;;  %1767 = vmatpush3.bf16.msra.mxu0 %v1891_v14 }
 0x10e   :  { %v298_v21 = vpop.f32.mrb[13].mxu1  ;;  %1768 = vmatprep.subr.bf16.mxu0 %v1893_v19 }
 0x10f   :  { %v1637_v23 = vpop.f32.mrb[14].mxu1 }
 0x110   :  { %v580_v24 = vpack.c.bf16 %v1637_v23, %v1636_v20  ;;  %v301_v25 = vpop.f32.mrb[15].mxu1 }
 0x111   :  { %v579_v26 = vpack.c.bf16 %v301_v25, %v298_v21  ;;  %1769 = vmatpush3.bf16.msra.mxu0 %v1893_v19 }
 0x112   :  { %1770 = vmatprep.subr.bf16.mxu0 %v1895_v22 }
 0x113   :  { %1754 = vmatprep.mubr.bf16.mxu0 %v579_v26 }
 0x114   :  { %1755 = vmatmul.mubr.bf16.gmra.mrb[12].mxu0 %v580_v24 }
 0x115   :  { %v1656_v28 = vpop.f32.mrb[16].mxu1  ;;  %1771 = vmatpush3.bf16.msra.mxu0 %v1895_v22 }
 0x116   :  { %v459_v29 = vpop.f32.mrb[17].mxu1  ;;  %1772 = vmatprep.subr.bf16.mxu0 %v1897_v27 }
 0x117   :  { %v1657_v30 = vpop.f32.mrb[18].mxu1 }
 0x118   :  { %v598_v31 = vpack.c.bf16 %v1657_v30, %v1656_v28  ;;  %v462_v32 = vpop.f32.mrb[19].mxu1 }
 0x119   :  { %v597_v33 = vpack.c.bf16 %v462_v32, %v459_v29  ;;  %1773 = vmatpush3.bf16.msra.mxu0 %v1897_v27 }
 0x11b   :  { %1774 = vmatprep.mubr.bf16.mxu0 %v597_v33 }
 0x11c   :  { %1775 = vmatmul.mubr.bf16.vlgmr.msra.gmra.mrb[0].mxu0 %v598_v31 }
 0x11d   :  { %v1660_v34 = vpop.f32.mrb[20].mxu1 }
 0x11e   :  { %v475_v35 = vpop.f32.mrb[21].mxu1 }
 0x11f   :  { %v1661_v36 = vpop.f32.mrb[22].mxu1 }
 0x120   :  { %v600_v37 = vpack.c.bf16 %v1661_v36, %v1660_v34  ;;  %v478_v38 = vpop.f32.mrb[23].mxu1 }
 0x121   :  { %v599_v39 = vpack.c.bf16 %v478_v38, %v475_v35 }
 0x123   :  { %1778 = vmatprep.mubr.bf16.mxu0 %v599_v39 }
 0x124   :  { %1779 = vmatmul.mubr.bf16.gmra.mrb[4].mxu0 %v600_v37 }
 0x125   :  { %v1664_v40 = vpop.f32.mrb[24].mxu1 }
 0x126   :  { %v491_v41 = vpop.f32.mrb[25].mxu1 }
 0x127   :  { %v1665_v42 = vpop.f32.mrb[26].mxu1 }
 0x128   :  { %v602_v43 = vpack.c.bf16 %v1665_v42, %v1664_v40  ;;  %v494_v44 = vpop.f32.mrb[27].mxu1 }
 0x129   :  { %v601_v45 = vpack.c.bf16 %v494_v44, %v491_v41 }
 0x12b   :  { %1782 = vmatprep.mubr.bf16.mxu0 %v601_v45 }
 0x12c   :  { %1783 = vmatmul.mubr.bf16.gmra.mrb[8].mxu0 %v602_v43 }
 0x12d   :  { %v1668_v46 = vpop.f32.mrb[28].mxu1 }
 0x12e   :  { %v507_v47 = vpop.f32.mrb[29].mxu1 }
 0x12f   :  { %v1669_v48 = vpop.f32.mrb[30].mxu1 }
 0x130   :  { %v604_v49 = vpack.c.bf16 %v1669_v48, %v1668_v46  ;;  %v510_v50 = vpop.f32.mrb[31].mxu1 }
 0x131   :  { %v603_v51 = vpack.c.bf16 %v510_v50, %v507_v47 }
 0x133   :  { %1786 = vmatprep.mubr.bf16.mxu0 %v603_v51 }
 0x134   :  { %1787 = vmatmul.mubr.bf16.gmra.mrb[12].mxu0 %v604_v49 }
 0x135   :  { %v1688_v52 = vpop.f32.mrb[32].mxu1 }
 0x136   :  { %v791_v53 = vpop.f32.mrb[33].mxu1 }
 0x137   :  { %v1689_v54 = vpop.f32.mrb[34].mxu1 }
 0x138   :  { %v794_v55 = vpop.f32.mrb[35].mxu1 }
 0x13d   :  { %v1692_v56 = vpop.f32.mrb[36].mxu1 }
 0x13e   :  { %v807_v57 = vpop.f32.mrb[37].mxu1 }
 0x13f   :  { %v1693_v58 = vpop.f32.mrb[38].mxu1 }
 0x140   :  { %v810_v59 = vpop.f32.mrb[39].mxu1 }
 0x145   :  { %v1696_v60 = vpop.f32.mrb[40].mxu1 }
 0x146   :  { %v823_v61 = vpop.f32.mrb[41].mxu1 }
 0x147   :  { %v1697_v62 = vpop.f32.mrb[42].mxu1 }
 0x148   :  { %v826_v63 = vpop.f32.mrb[43].mxu1 }
 0x14d   :  { %v1700_v0 = vpop.f32.mrb[44].mxu1 }
 0x14e   :  { %v839_v1 = vpop.f32.mrb[45].mxu1 }
 0x14f   :  { %v1701_v2 = vpop.f32.mrb[46].mxu1 }
 0x150   :  { %v842_v3 = vpop.f32.mrb[47].mxu1 }
 0x1ef   :  { %v1776_v4 = vpop.f32.mrb[0].mxu0 }
 0x1f0   :  { %v1790_v6 = vadd.f32 %v1776_v4, %v1688_v52  ;;  %v1315_v7 = vpop.f32.mrb[1].mxu0 }
 0x1f1   :  { %v1791_v8 = vadd.f32 %v1315_v7, %v791_v53  ;;  %v1777_v9 = vpop.f32.mrb[2].mxu0 }
 0x1f2   :  { %v1403_v10 = vadd.f32 %v1790_v6, %v1513_v5  ;;  %v1792_v11 = vadd.f32 %v1777_v9, %v1689_v54  ;;  %v1318_v12 = vpop.f32.mrb[3].mxu0 }
 0x1f3   :  { %v1401_v13 = vadd.f32 %v1791_v8, %v1513_v5  ;;  %v1793_v14 = vadd.f32 %v1318_v12, %v794_v55 }
 0x1f4   :  { %1419 = vst [vmem:[%s2264_s10 + $0x10] sm:$0xff] %v1403_v10  ;;  %v1404_v15 = vadd.f32 %v1792_v11, %v1513_v5 }
 0x1f5   :  { %1417 = vst [vmem:[%s2264_s10] sm:$0xff] %v1401_v13  ;;  %v1402_v16 = vadd.f32 %v1793_v14, %v1513_v5 }
 0x1f6   :  { %1420 = vst [vmem:[%s2264_s10 + $0x18] sm:$0xff] %v1404_v15 }
 0x1f7   :  { %1418 = vst [vmem:[%s2264_s10 + $0x8] sm:$0xff] %v1402_v16  ;;  %v1780_v17 = vpop.f32.mrb[4].mxu0 }
 0x1f8   :  { %v1794_v18 = vadd.f32 %v1780_v17, %v1692_v56  ;;  %v1331_v19 = vpop.f32.mrb[5].mxu0 }
 0x1f9   :  { %v1795_v20 = vadd.f32 %v1331_v19, %v807_v57  ;;  %v1781_v21 = vpop.f32.mrb[6].mxu0 }
 0x1fa   :  { %v1407_v22 = vadd.f32 %v1794_v18, %v1513_v5  ;;  %v1796_v23 = vadd.f32 %v1781_v21, %v1693_v58  ;;  %v1334_v24 = vpop.f32.mrb[7].mxu0 }
 0x1fb   :  { %v1405_v25 = vadd.f32 %v1795_v20, %v1513_v5  ;;  %v1797_v26 = vadd.f32 %v1334_v24, %v810_v59 }
 0x1fc   :  { %1423 = vst [vmem:[%s2264_s10 + $0x30] sm:$0xff] %v1407_v22  ;;  %v1408_v27 = vadd.f32 %v1796_v23, %v1513_v5 }
 0x1fd   :  { %1421 = vst [vmem:[%s2264_s10 + $0x20] sm:$0xff] %v1405_v25  ;;  %v1406_v28 = vadd.f32 %v1797_v26, %v1513_v5 }
 0x1fe   :  { %1424 = vst [vmem:[%s2264_s10 + $0x38] sm:$0xff] %v1408_v27 }
 0x1ff   :  { %1422 = vst [vmem:[%s2264_s10 + $0x28] sm:$0xff] %v1406_v28  ;;  %v1784_v29 = vpop.f32.mrb[8].mxu0 }
 0x200   :  { %v1798_v30 = vadd.f32 %v1784_v29, %v1696_v60  ;;  %v1347_v31 = vpop.f32.mrb[9].mxu0 }
 0x201   :  { %v1799_v32 = vadd.f32 %v1347_v31, %v823_v61  ;;  %v1785_v33 = vpop.f32.mrb[10].mxu0 }
 0x202   :  { %v1411_v34 = vadd.f32 %v1798_v30, %v1513_v5  ;;  %v1800_v35 = vadd.f32 %v1785_v33, %v1697_v62  ;;  %v1350_v36 = vpop.f32.mrb[11].mxu0 }
 0x203   :  { %v1409_v37 = vadd.f32 %v1799_v32, %v1513_v5  ;;  %v1801_v38 = vadd.f32 %v1350_v36, %v826_v63 }
 0x204   :  { %1427 = vst [vmem:[%s2264_s10 + $0x50] sm:$0xff] %v1411_v34  ;;  %v1412_v39 = vadd.f32 %v1800_v35, %v1513_v5 }
 0x205   :  { %1425 = vst [vmem:[%s2264_s10 + $0x40] sm:$0xff] %v1409_v37  ;;  %v1410_v40 = vadd.f32 %v1801_v38, %v1513_v5 }
 0x206   :  { %1428 = vst [vmem:[%s2264_s10 + $0x58] sm:$0xff] %v1412_v39 }
 0x207   :  { %1426 = vst [vmem:[%s2264_s10 + $0x48] sm:$0xff] %v1410_v40  ;;  %v1788_v41 = vpop.f32.mrb[12].mxu0 }
 0x208   :  { %v1802_v42 = vadd.f32 %v1788_v41, %v1700_v0  ;;  %v1363_v43 = vpop.f32.mrb[13].mxu0 }
 0x209   :  { %v1803_v44 = vadd.f32 %v1363_v43, %v839_v1  ;;  %v1789_v45 = vpop.f32.mrb[14].mxu0 }
 0x20a   :  { %v1415_v46 = vadd.f32 %v1802_v42, %v1513_v5  ;;  %v1804_v47 = vadd.f32 %v1789_v45, %v1701_v2  ;;  %v1366_v48 = vpop.f32.mrb[15].mxu0 }
 0x20b   :  { %v1413_v49 = vadd.f32 %v1803_v44, %v1513_v5  ;;  %v1805_v50 = vadd.f32 %v1366_v48, %v842_v3 }
 0x20c   :  { %1431 = vst [vmem:[%s2264_s10 + $0x70] sm:$0xff] %v1415_v46  ;;  %v1416_v51 = vadd.f32 %v1804_v47, %v1513_v5 }
 0x20d   :  { %1429 = vst [vmem:[%s2264_s10 + $0x60] sm:$0xff] %v1413_v49  ;;  %v1414_v52 = vadd.f32 %v1805_v50, %v1513_v5 }
 0x20e   :  { %1432 = vst [vmem:[%s2264_s10 + $0x78] sm:$0xff] %v1416_v51 }
 0x20f   :  { %1430 = vst [vmem:[%s2264_s10 + $0x68] sm:$0xff] %v1414_v52 }

</bundles_post_ra>
